<compile_context>
chip_gen: v6e
topology: v6e:2x2x1
jax: 0.10.0
libtpu: 0.0.40
codegen_flags: <defaults>
</compile_context>

<pallas_src>
import functools
import math

import jax
import jax.numpy as jnp
from jax import lax
from jax.experimental import pallas as pl
from jax.experimental.pallas import tpu as pltpu


def _memory_unit_kernel(x_ref, w_ref, o_ref):
    w = w_ref[...]                                 # (mem_dim, fea_dim), compute dtype
    x = x_ref[...].astype(w.dtype)                 # (block_t, fea_dim)

    # att = x @ w^T expressed as an NT contraction (no explicit transpose).
    att = lax.dot_general(
        x, w,
        dimension_numbers=(((1,), (1,)), ((), ())),
        preferred_element_type=jnp.float32)        # (block_t, mem_dim) f32

    # Row-wise softmax over the memory dimension, all math in f32.
    att_max = jnp.max(att, axis=-1, keepdims=True)
    att_exp = jnp.exp(att - att_max)
    att_sum = jnp.sum(att_exp, axis=-1, keepdims=True)
    att = att_exp * pl.reciprocal(att_sum, approx=True)

    # output = att @ w  (operands in the compute dtype for the MXU, f32 acc).
    out = jnp.dot(att.astype(w.dtype), w, preferred_element_type=jnp.float32)
    o_ref[...] = out.astype(o_ref.dtype)


def _round_up(a, b):
    return (a + b - 1) // b * b


def _vmem_estimate(block_t, fea_dim, mem_dim, x_bytes, w_bytes, out_bytes):
    # Worst-case footprint: double-buffered x/out tiles, (worst case double-
    # buffered) weight, f32 att intermediate, f32 output accumulator.
    return (2 * block_t * fea_dim * x_bytes
            + 2 * block_t * fea_dim * out_bytes
            + 2 * mem_dim * fea_dim * w_bytes
            + block_t * mem_dim * 4
            + block_t * fea_dim * 4)


def _vmem_budget_bytes():
    capacity = 64 << 20          # conservative fallback == v7x per-core VMEM
    try:
        capacity = int(pltpu.get_tpu_info().vmem_capacity_bytes)
    except Exception:            # query unavailable -> stay conservative
        pass
    # <= ~100 MiB on 128 MiB parts, <= ~56 MiB on 64 MiB parts.
    return min(capacity - (8 << 20), 100 << 20)


def _select_block_t(t, tm, fea_dim, mem_dim, x_bytes, w_bytes, out_bytes, budget):
    if t <= 8:
        return t  # single tiny block; block_shape equals the full array dims
    # Big tiles stream the MXU / HBM better, but keep >= 2 grid steps so both
    # v7x TensorCores get work and the pipeline has depth.
    block_t = min(_round_up(t, 8),
                  _round_up(pl.cdiv(t, 2), 8),
                  max(_round_up(tm, 8), 8))
    block_t = max(block_t, 8)
    # Shrink (keeping a multiple of 8) until the footprint fits the budget.
    while block_t > 8 and _vmem_estimate(
            block_t, fea_dim, mem_dim, x_bytes, w_bytes, out_bytes) > budget:
        block_t = max(_round_up(block_t // 2, 8), 8)
    return block_t


@functools.lru_cache(maxsize=None)
def _build_call(t, fea_dim, mem_dim, block_t, out_dtype, vmem_limit,
                single_buffer_weight):
    w_spec_kwargs = {}
    if single_buffer_weight:
        # Constant index map -> weight is loaded once; single-buffer it so it
        # does not pay for two copies in VMEM.
        w_spec_kwargs["pipeline_mode"] = pl.Buffered(1)
    return pl.pallas_call(
        _memory_unit_kernel,
        out_shape=jax.ShapeDtypeStruct((t, fea_dim), out_dtype),
        grid_spec=pltpu.PrefetchScalarGridSpec(
            num_scalar_prefetch=0,
            grid=(pl.cdiv(t, block_t),),
            in_specs=[
                # x tile: marches down T (partial last block is masked).
                pl.BlockSpec((block_t, fea_dim), lambda i: (i, 0)),
                # weight: same block every step -> stays resident in VMEM.
                pl.BlockSpec((mem_dim, fea_dim), lambda i: (0, 0),
                             **w_spec_kwargs),
            ],
            out_specs=pl.BlockSpec((block_t, fea_dim), lambda i: (i, 0)),
        ),
        compiler_params=pltpu.CompilerParams(
            dimension_semantics=("parallel",),
            vmem_limit_bytes=vmem_limit),
    )


def memory_unit_forward(x, weight, *, tm=512, use_bf16=True):
    """Pallas TPU forward for MemoryUnit.  Returns (T, fea_dim) in x.dtype."""
    # Mirror the PyTorch 1-D input handling.
    if x.ndim == 1:
        x = x[None, :]
    t, fea_dim = x.shape
    mem_dim, fea_dim_w = weight.shape
    if fea_dim != fea_dim_w:
        raise ValueError("input fea_dim does not match weight fea_dim")

    # Cast the weight once in the wrapper: halves HBM traffic + VMEM residency
    # and makes both matmuls bf16-native on the MXU (f32 accumulation).
    w = weight.astype(jnp.bfloat16) if use_bf16 else weight

    out_dtype = jnp.dtype(x.dtype)
    x_bytes = jnp.dtype(x.dtype).itemsize
    w_bytes = jnp.dtype(w.dtype).itemsize
    out_bytes = out_dtype.itemsize

    budget = _vmem_budget_bytes()
    block_t = _select_block_t(t, tm, fea_dim, mem_dim,
                              x_bytes, w_bytes, out_bytes, budget)
    est = _vmem_estimate(block_t, fea_dim, mem_dim, x_bytes, w_bytes, out_bytes)
    vmem_limit = int(min(budget, est + (16 << 20)))

    fn = _build_call(t, fea_dim, mem_dim, block_t, out_dtype, vmem_limit, True)
    try:
        return fn(x, w)
    except Exception:
        # Fallback for JAX versions that reject single-buffered BlockSpecs.
        fn = _build_call(t, fea_dim, mem_dim, block_t, out_dtype, vmem_limit,
                         False)
        return fn(x, w)


def reference_forward(x, weight):
    if x.ndim == 1:
        x = x[None, :]
    att = x.astype(jnp.float32) @ weight.astype(jnp.float32).T
    att = jax.nn.softmax(att, axis=1)
    return att @ weight.astype(jnp.float32)


if __name__ == "__main__":
    key = jax.random.PRNGKey(0)
    k_w1, k_x1, k_w2, k_x2, k_x3 = jax.random.split(key, 5)

    # Case 1: module defaults (mem_dim=fea_dim=256), T not a multiple of the
    # tile -> partial last block masking + bf16 MXU path + 2-step grid.
    mem_dim, fea_dim, T = 256, 256, 200
    stdv = 1.0 / math.sqrt(fea_dim)   # reset_parameters(): U(-stdv, stdv)
    weight = jax.random.uniform(k_w1, (mem_dim, fea_dim), jnp.float32,
                                minval=-stdv, maxval=stdv)
    x = jax.random.normal(k_x1, (T, fea_dim), dtype=jnp.float32)

    out = jax.block_until_ready(memory_unit_forward(x, weight))
    ref = reference_forward(x, weight)
    assert out.shape == (T, fea_dim)
    assert bool(jnp.all(jnp.isfinite(out)))
    err = float(jnp.max(jnp.abs(out - ref)))
    assert err < 1e-2, err

    # Case 2: small unaligned dims, exact f32 path (use_bf16=False).
    mem_dim2, fea_dim2, T2 = 64, 32, 16
    stdv2 = 1.0 / math.sqrt(fea_dim2)
    weight2 = jax.random.uniform(k_w2, (mem_dim2, fea_dim2), jnp.float32,
                                 minval=-stdv2, maxval=stdv2)
    x2 = jax.random.normal(k_x2, (T2, fea_dim2), dtype=jnp.float32)

    out2 = jax.block_until_ready(memory_unit_forward(x2, weight2,
                                                     use_bf16=False))
    ref2 = reference_forward(x2, weight2)
    assert out2.shape == (T2, fea_dim2)
    err2 = float(jnp.max(jnp.abs(out2 - ref2)))
    assert err2 < 1e-3, err2

    # Case 3: 1-D input (module unsqueezes it to a single row).
    x3 = jax.random.normal(k_x3, (fea_dim,), dtype=jnp.float32)
    out3 = jax.block_until_ready(memory_unit_forward(x3, weight))
    ref3 = reference_forward(x3, weight)
    assert out3.shape == (1, fea_dim)
    err3 = float(jnp.max(jnp.abs(out3 - ref3)))
    assert err3 < 1e-2, err3

    print("KERNEL_OK")
</pallas_src>

<mosaic_0001>
module attributes {stable_mosaic.version = 11 : i64} {
  func.func @_memory_unit_kernel(%arg0: i32, %arg1: memref<104x256xf32, #tpu.memory_space<vmem>>, %arg2: memref<256x256xbf16, #tpu.memory_space<vmem>>, %arg3: memref<104x256xf32, #tpu.memory_space<vmem>>) attributes {dimension_semantics = [#tpu.dimension_semantics<parallel>], iteration_bounds = array<i64: 2>, scalar_prefetch = 0 : i64, scratch_operands = 0 : i64, tpu.core_type = #tpu.core_type<tc>, window_params = [{transform_indices = @transform_0, window_bounds = array<i64: 104, 256>}, {pipeline_mode = #tpu.pipeline_mode<synchronous>, transform_indices = @transform_1, window_bounds = array<i64: 256, 256>}, {transform_indices = @transform_2, window_bounds = array<i64: 104, 256>}]} {
    %c0 = arith.constant 0 : index
    %c0_0 = arith.constant 0 : index
    %0 = vector.load %arg2[%c0, %c0_0] : memref<256x256xbf16, #tpu.memory_space<vmem>>, vector<256x256xbf16>
    %c0_1 = arith.constant 0 : index
    %c0_2 = arith.constant 0 : index
    %1 = vector.load %arg1[%c0_1, %c0_2] : memref<104x256xf32, #tpu.memory_space<vmem>>, vector<104x256xf32>
    %2 = arith.truncf %1 : vector<104x256xf32> to vector<104x256xbf16>
    %cst = arith.constant dense<0.000000e+00> : vector<104x256xf32>
    %3 = tpu.matmul %2, %0, %cst {dimension_numbers = #tpu.dot_dimension_numbers<[1], [1], [0], [0], [0, 0, 1, 0], [], []>} : vector<104x256xbf16>, vector<256x256xbf16>, vector<104x256xf32> -> vector<104x256xf32>
    %cst_3 = arith.constant dense<0xFF800000> : vector<104xf32>
    %4 = vector.multi_reduction <maximumf>, %3, %cst_3 [1] : vector<104x256xf32> to vector<104xf32>
    %5 = vector.shape_cast %4 : vector<104xf32> to vector<104x1xf32>
    %6 = vector.broadcast %5 : vector<104x1xf32> to vector<104x256xf32>
    %7 = arith.subf %3, %6 : vector<104x256xf32>
    %8 = math.exp %7 : vector<104x256xf32>
    %cst_4 = arith.constant dense<0.000000e+00> : vector<104xf32>
    %9 = vector.multi_reduction <add>, %8, %cst_4 [1] : vector<104x256xf32> to vector<104xf32>
    %10 = vector.shape_cast %9 : vector<104xf32> to vector<104x1xf32>
    %11 = tpu.reciprocal %10 {approx = true} : vector<104x1xf32> -> vector<104x1xf32>
    %12 = vector.broadcast %11 : vector<104x1xf32> to vector<104x256xf32>
    %13 = arith.mulf %8, %12 : vector<104x256xf32>
    %14 = arith.truncf %13 : vector<104x256xf32> to vector<104x256xbf16>
    %cst_5 = arith.constant dense<0.000000e+00> : vector<104x256xf32>
    %15 = tpu.matmul %14, %0, %cst_5 {dimension_numbers = #tpu.dot_dimension_numbers<[1], [0], [0], [1], [0, 0, 1, 1], [], []>} : vector<104x256xbf16>, vector<256x256xbf16>, vector<104x256xf32> -> vector<104x256xf32>
    %c0_6 = arith.constant 0 : index
    %c0_7 = arith.constant 0 : index
    %16 = vector.load %arg3[%c0_6, %c0_7] : memref<104x256xf32, #tpu.memory_space<vmem>>, vector<104x256xf32>
    tpu.vector_store %arg3[%c0_6, %c0_7], %15 {strides = array<i32>} : memref<104x256xf32, #tpu.memory_space<vmem>>, vector<104x256xf32>,
    return
  }
  func.func @transform_0(%arg0: i32) -> (i32, i32) {
    %c0_i32 = arith.constant 0 : i32
    %c0_i32_0 = arith.constant 0 : i32
    return %arg0, %c0_i32 : i32, i32
  }
  func.func @transform_1(%arg0: i32) -> (i32, i32) {
    %c0_i32 = arith.constant 0 : i32
    %c0_i32_0 = arith.constant 0 : i32
    %c0_i32_1 = arith.constant 0 : i32
    return %c0_i32, %c0_i32_0 : i32, i32
  }
  func.func @transform_2(%arg0: i32) -> (i32, i32) {
    %c0_i32 = arith.constant 0 : i32
    %c0_i32_0 = arith.constant 0 : i32
    return %arg0, %c0_i32 : i32, i32
  }
}

module attributes {stable_mosaic.version = 11 : i64} {
  func.func @_memory_unit_kernel(%arg0: i32, %arg1: memref<104x256xf32, #tpu.memory_space<vmem>>, %arg2: memref<256x256xbf16, #tpu.memory_space<vmem>>, %arg3: memref<104x256xf32, #tpu.memory_space<vmem>>) attributes {dimension_semantics = [#tpu.dimension_semantics<parallel>], iteration_bounds = array<i64: 2>, scalar_prefetch = 0 : i64, scratch_operands = 0 : i64, tpu.core_type = #tpu.core_type<tc>, window_params = [{transform_indices = @transform_0, window_bounds = array<i64: 104, 256>}, {pipeline_mode = #tpu.pipeline_mode<synchronous>, transform_indices = @transform_1, window_bounds = array<i64: 256, 256>}, {transform_indices = @transform_2, window_bounds = array<i64: 104, 256>}]} {
    %c0 = arith.constant 0 : index
    %c0_0 = arith.constant 0 : index
    %0 = vector.load %arg2[%c0, %c0_0] : memref<256x256xbf16, #tpu.memory_space<vmem>>, vector<256x256xbf16>
    %c0_1 = arith.constant 0 : index
    %c0_2 = arith.constant 0 : index
    %1 = vector.load %arg1[%c0_1, %c0_2] : memref<104x256xf32, #tpu.memory_space<vmem>>, vector<104x256xf32>
    %2 = arith.truncf %1 : vector<104x256xf32> to vector<104x256xbf16>
    %cst = arith.constant dense<0.000000e+00> : vector<104x256xf32>
    %3 = tpu.matmul %2, %0, %cst {dimension_numbers = #tpu.dot_dimension_numbers<[1], [1], [0], [0], [0, 0, 1, 0], [], []>} : vector<104x256xbf16>, vector<256x256xbf16>, vector<104x256xf32> -> vector<104x256xf32>
    %cst_3 = arith.constant dense<0xFF800000> : vector<104xf32>
    %4 = vector.multi_reduction <maximumf>, %3, %cst_3 [1] : vector<104x256xf32> to vector<104xf32>
    %5 = vector.shape_cast %4 : vector<104xf32> to vector<104x1xf32>
    %6 = vector.broadcast %5 : vector<104x1xf32> to vector<104x256xf32>
    %7 = arith.subf %3, %6 : vector<104x256xf32>
    %8 = math.exp %7 : vector<104x256xf32>
    %cst_4 = arith.constant dense<0.000000e+00> : vector<104xf32>
    %9 = vector.multi_reduction <add>, %8, %cst_4 [1] : vector<104x256xf32> to vector<104xf32>
    %10 = vector.shape_cast %9 : vector<104xf32> to vector<104x1xf32>
    %11 = tpu.reciprocal %10 {approx = true} : vector<104x1xf32> -> vector<104x1xf32>
    %12 = vector.broadcast %11 : vector<104x1xf32> to vector<104x256xf32>
    %13 = arith.mulf %8, %12 : vector<104x256xf32>
    %14 = arith.truncf %13 : vector<104x256xf32> to vector<104x256xbf16>
    %cst_5 = arith.constant dense<0.000000e+00> : vector<104x256xf32>
    %15 = tpu.matmul %14, %0, %cst_5 {dimension_numbers = #tpu.dot_dimension_numbers<[1], [0], [0], [1], [0, 0, 1, 1], [], []>} : vector<104x256xbf16>, vector<256x256xbf16>, vector<104x256xf32> -> vector<104x256xf32>
    %c0_6 = arith.constant 0 : index
    %c0_7 = arith.constant 0 : index
    %16 = vector.load %arg3[%c0_6, %c0_7] : memref<104x256xf32, #tpu.memory_space<vmem>>, vector<104x256xf32>
    tpu.vector_store %arg3[%c0_6, %c0_7], %15 {strides = array<i32>} : memref<104x256xf32, #tpu.memory_space<vmem>>, vector<104x256xf32>,
    return
  }
  func.func @transform_0(%arg0: i32) -> (i32, i32) {
    %c0_i32 = arith.constant 0 : i32
    %c0_i32_0 = arith.constant 0 : i32
    return %arg0, %c0_i32 : i32, i32
  }
  func.func @transform_1(%arg0: i32) -> (i32, i32) {
    %c0_i32 = arith.constant 0 : i32
    %c0_i32_0 = arith.constant 0 : i32
    %c0_i32_1 = arith.constant 0 : i32
    return %c0_i32, %c0_i32_0 : i32, i32
  }
  func.func @transform_2(%arg0: i32) -> (i32, i32) {
    %c0_i32 = arith.constant 0 : i32
    %c0_i32_0 = arith.constant 0 : i32
    return %arg0, %c0_i32 : i32, i32
  }
}

</mosaic_0001>

<bundles_post_ra>
// kernel: tpu_custom_call.1
= control target key start
LH: loop header
LB: loop body
LE: loop exit
PB: predicated region body
PF: predicated region fallthrough
CT: control target
= control target key end

     0   :  { %7 = vsyncpa [#allocation3], 0  ;;  %s1809_s0 = inlined_call_operand.hbm [shape: f32[200,256], index: 0, kind: input, shape index: {}]   ;;  %s1810_s1 = inlined_call_operand.hbm [shape: bf16[256,256], index: 1, kind: input, shape index: {}]   ;;  %s1811_s2 = inlined_call_operand.hbm [shape: f32[200,256], index: 2, kind: output, shape index: {}]  }
   0x1   :  { %9 = vsyncpa [#allocation3 + $0x1], 0 }
   0x2   :  { %10 = vsyncpa [#allocation6], 0 }
   0x3   :  { %11 = vsyncpa [#allocation4], 0 }
   0x4   :  { %13 = vsyncpa [#allocation4 + $0x1], 0  ;;  %s1363_s9 = smov 0   ;;  %s1365_s10 = smov 0  }
   0x5   :  { %s1367_s11 = smov 0   ;;  %s1369_s12 = smov 0  }
   0x6 LB: > { %s1384_s13 = sadd.s32 4294967295, %s1337_s12   ;;  %s971_s14 = sadd.s32 4294967294, %s1337_s12   ;;  %s1337_s12 = sphi %s1369_s12, %s1826_s12   ;;  %s1333_s11 = sphi %s1367_s11, %s1825_s11   ;;  %s1329_s10 = sphi %s1365_s10, %s1824_s10   ;;  %s1325_s9 = sphi %s1363_s9, %s1823_s9  }
   0x7   : > { %s1388_s15 = sadd.s32 1, %s1337_s12   ;;  %s26_s16 = sadd.s32 1, %s1333_s11 }
   0x8   : > { %s23_s17 = ssub.s32 %s1337_s12, %s1388_s15  ;;  %p33_p0 = scmp.ne.s32.totalorder %s1333_s11, %s1329_s10 }
   0x9   : > { %p24_p1 = scmp.eq.s32.totalorder %s23_s17, 0  ;;  %p34_p2 = scmp.eq.s32.totalorder %s1337_s12, 0 }
   0xa   : > { %p39_p3 = scmp.ne.s32.totalorder %s1329_s10, %s1325_s9  ;;  %p40_p4 = scmp.eq.s32.totalorder %s1384_s13, 0 }
   0xb   : > { %s1400_s18 = scalar_select %p24_p1, %s1333_s11, %s26_s16  }
   0xc   : > { %p1402_p5 = por %p34_p2, %p33_p0  ;;  %p1408_p6 = por %p40_p4, %p39_p3 }
   0xd   : > { %p84_p7 = scmp.eq.s32.totalorder %s1384_s13, 1  ;;  %p90_p8 = scmp.eq.s32.totalorder %s971_s14, 1 }
   0xe   : > { %s1815_s20 = scalar_select %p1408_p6, 1, 0 }
   0xf   : > { %p972_p9 = scmp.ge.s32.totalorder %s1337_s12, 1  ;;  %p97_p10 = scmp.lt.s32.totalorder %s1337_s12, 3 }
  0x10   : > { %p1415_p11 = por %p84_p7, %p33_p0  ;;  %p1419_p12 = por %p90_p8, %p39_p3 }
  0x11   : > { %p1423_p13 = pnand %p972_p9, %p97_p10  ;;  %s1339_s24 = smov [#allocation5]  }
  0x12   : > { %s1816_s21 = scalar_select %p1415_p11, 1, 0 }
  0x13   : > { %s1817_s22 = scalar_select %p1419_p12, 1, 0 }
  0x14   : > { %p1041_p1 = pneg %p1423_p13  ;;  %s109_s25 = sshll.u32 %s1339_s24, 4  ;;  %s110_s25 = int_to_ptr.vmem [resolvable:$true] %s109_s25 }
  0x15   : > { %s1228_s26 = scalar_lea.vmem %s110_s25, 4096  ;;  %p1236_p8 = scmp.lt.s32.totalorder %s110_s25, %s110_s25 }
  0x16   : > { %p1042_p2 = pnand %p1041_p1, %p40_p4  ;;  %p1229_p7 = scmp.ne.s32.totalorder %s110_s25, %s1228_s26 }
  0x17   : > { %p1237_p6 = scmp.lt.s32.totalorder %s1228_s26, %s1228_s26 }
  0x18   : > { %p1219_p0 = pneg %p1042_p2 }
  0x19   : > { %p1238_p12 = por %p1237_p6, %p1236_p8 }
  0x1a   : > { %p1231_p11 = pnand %p1229_p7, %p1219_p0 }
  0x1c   : > { %p1232_p3 = pneg %p1231_p11 }
  0x1e   : > { %p1239_p9 = pnand %p1238_p12, %p1232_p3 }
  0x20   : > { %1242 = shalt.err (!%p1239_p9)
}
  0x21   : > { %s1340_s27 = smov 128   ;;  %s1341_s28 = smov 8  }
  0x22   : > { %1044 = dma.hbm_to_vmem [thread:$0]  (!%p1042_p2), %s1810_s1, 4096, %s110_s25, [#allocation6], %s1340_s27, %s1340_s27, %s1341_s28  }
  0x23   : > { %p1813_p10 = scmp.ge.s32.totalorder %s1337_s12, 2 }
  0x25   : > { %119 = sbr.rel (%p1813_p10) target bundleno = 76 (0x4c), region = 20 }
  0x2a   : > { %122 = sbr.rel (!%p1402_p5) target bundleno = 76 (0x4c), region = 24  ;;  %s123_s3 = sand.u32 (%p1402_p5), 1, %s1333_s11  }
  0x2b   : > { %s128_s4 = smul.u32 (%p1402_p5), 13, %s1337_s12  ;;  %s1444_s14 = scalar_lea.sflag (%p1402_p5), [#allocation3], %s123_s3 }
  0x2c   : > { %s1033_s5 = smul.u32 (%p1402_p5), 208, %s123_s3 }
  0x2d   : > { %s129_s6 = ssub.s32 (%p1402_p5), 25, %s128_s4 }
  0x2e   : > { %p130_p6 = scmp.lt.s32.totalorder (%p1402_p5), %s129_s6, 13  ;;  %s127_s16 = scalar_lea.vmem (%p1402_p5), [#allocation2], %s1033_s5 }
  0x30   : > { %s1828_s6 = smov (!%p130_p6, %s129_s6), 13 }
  0x31   : > { %s1441_s7 = sshll.u32 %s1828_s6, 8 }
  0x32   : > { %s135_s8 = ssub.s32 3328, %s1441_s7 }
  0x33   : > { %136 = vsyncadd %s1444_s14, %s135_s8  ;;  %p977_p5 = scmp.ne.s32.totalorder %s1441_s7, 0  ;;  %s1031_s17 = smul.u32 3328, %s1337_s12 }
  0x34   : > { %s142_s19 = sshll.u32 %s127_s16, 4  ;;  %s1247_s30 = scalar_lea.hbm %s1809_s0, 6400  ;;  %s1454_s19 = int_to_ptr.vmem [resolvable:$true] %s142_s19 }
  0x35   : > { %s1452_s26 = scalar_lea.hbm %s1809_s0, %s1031_s17 }
  0x36   : > { %s1243_s27 = scalar_lea.hbm %s1452_s26, %s1441_s7  ;;  %p1248_p2 = scmp.lt.s32.totalorder %s1452_s26, %s1809_s0 }
  0x37   : > { %p1244_p11 = scmp.ne.s32.totalorder %s1452_s26, %s1243_s27  ;;  %p1249_p0 = scmp.lt.s32.totalorder %s1247_s30, %s1243_s27 }
  0x39   : > { %p1245_p12 = pnand %p1244_p11, %p977_p5  ;;  %p1250_p7 = por %p1249_p0, %p1248_p2 }
  0x3b   : > { %p1246_p1 = pneg %p1245_p12 }
  0x3d   : > { %p1251_p3 = pnand %p1250_p7, %p1246_p1 }
  0x3f   : > { %1254 = shalt.err (!%p1251_p3)
}
  0x40   : > { %s1255_s5 = scalar_lea.vmem %s1454_s19, %s1441_s7  ;;  %s1342_s6 = smov [#allocation2]  }
  0x41   : > { %p1256_p8 = scmp.ne.s32.totalorder %s1454_s19, %s1255_s5  ;;  %s1259_s8 = sshll.u32 %s1342_s6, 4  ;;  %s1260_s8 = int_to_ptr.vmem [resolvable:$false] %s1259_s8 }
  0x42   : > { %s1261_s16 = scalar_lea.vmem %s1260_s8, 6656  ;;  %p1262_p11 = scmp.lt.s32.totalorder %s1454_s19, %s1260_s8 }
  0x43   : > { %p1257_p9 = pnand %p1256_p8, %p977_p5  ;;  %p1263_p12 = scmp.lt.s32.totalorder %s1261_s16, %s1255_s5 }
  0x45   : > { %p1258_p6 = pneg %p1257_p9  ;;  %p1264_p10 = por %p1263_p12, %p1262_p11 }
  0x47   : > { %p1265_p2 = pnand %p1264_p10, %p1258_p6 }
  0x49   : > { %1268 = shalt.err (!%p1265_p2)
}
  0x4a   : > { %s1343_s17 = smov 256   ;;  %s1344_s24 = smov 16  }
  0x4b   : > { %148 = dma.hbm_to_vmem [thread:$0]  (%p977_p5), %s1452_s26, %s1441_s7, %s1454_s19, %s1444_s14, %s1343_s17, %s1343_s17, %s1344_s24  }
  0x4c PF: > { %154 = sbr.rel (%p1423_p13) target bundleno = 1004 (0x3ec), region = 28  ;;  %s1483_s25 = sand.u32 (!%p1423_p13), 1, %s1329_s10  }
  0x4d   : > { %s1034_s27 = smul.u32 (!%p1423_p13), 208, %s1483_s25  ;;  %s157_s28 = scalar_lea.sflag (!%p1423_p13), [#allocation3], %s1483_s25 }
  0x4e   : > { %p1819_p10 = scmp.ne.s32.totalorder (!%p1423_p13), %s1815_s20, 0 }
  0x4f   : > { %s1489_s29 = scalar_lea.vmem (!%p1423_p13), [#allocation2], %s1034_s27 }
  0x51   : > { %1312 = dma.done.wait (%p1819_p10), %s157_s28, 3328  }
  0x52   : > { %1314 = vsyncadd (%p1819_p10), %s157_s28, 4294963968 }
  0x53   : > { %1316 = dma.done.wait (%p40_p4), [#allocation6], 4096  }
  0x54   : > { %1318 = vsyncadd (%p40_p4), [#allocation6], 4294963200  ;;  %v1091_v0 = vld [vmem:[#allocation5 + $0x74] ss:$8 sps:$4 sm:$0xff]   ;;  %v1093_v1 = vld [vmem:[#allocation5 + $0x70] ss:$8 sps:$4 sm:$0xff]  }
  0x55   : > { %429 = vmatprep.subr.bf16.mxu0 %v1091_v0  ;;  %v1094_v2 = vld [vmem:[#allocation5 + $0x64] ss:$8 sps:$4 sm:$0xff]   ;;  %739 = vmatprep.subr.bf16.mxu1 %v1091_v0  ;;  %v1096_v3 = vld [vmem:[#allocation5 + $0x60] ss:$8 sps:$4 sm:$0xff]   ;;  %v1097_v4 = vld [vmem:[#allocation5 + $0x54] ss:$8 sps:$4 sm:$0xff]  }
  0x56   : > { %430 = vmatpush1.bf16.xpose.msra.mxu0 %v1093_v1  ;;  %740 = vmatpush1.bf16.msra.mxu1 %v1093_v1  ;;  %v1099_v5 = vld [vmem:[#allocation5 + $0x50] ss:$8 sps:$4 sm:$0xff]   ;;  %v1100_v6 = vld [vmem:[#allocation5 + $0x44] ss:$8 sps:$4 sm:$0xff]   ;;  %v1102_v7 = vld [vmem:[#allocation5 + $0x40] ss:$8 sps:$4 sm:$0xff]  }
  0x57   : > { %431 = vmatprep.subr.bf16.mxu0 %v1094_v2  ;;  %741 = vmatprep.subr.bf16.mxu1 %v1094_v2  ;;  %v1103_v8 = vld [vmem:[#allocation5 + $0x34] ss:$8 sps:$4 sm:$0xff]   ;;  %v1105_v9 = vld [vmem:[#allocation5 + $0x30] ss:$8 sps:$4 sm:$0xff]   ;;  %v1106_v10 = vld [vmem:[#allocation5 + $0x24] ss:$8 sps:$4 sm:$0xff]  }
  0x58   : > { %v1108_v11 = vld [vmem:[#allocation5 + $0x20] ss:$8 sps:$4 sm:$0xff]   ;;  %v1109_v14 = vld [vmem:[#allocation5 + $0x14] ss:$8 sps:$4 sm:$0xff]   ;;  %v1111_v16 = vld [vmem:[#allocation5 + $0x10] ss:$8 sps:$4 sm:$0xff]  }
  0x59   : > { %v230_v12 = vld [vmem:[%s1489_s29 + $0x8] sm:$0xff]  ;;  %v232_v13 = vld [vmem:[%s1489_s29 + $0x18] sm:$0xff]  ;;  %v229_v35 = vld [vmem:[%s1489_s29] sm:$0xff]  ;;  %s1719_s20 = scalar_lea.vmem [#allocation7], %s1034_s27  ;;  %s867_s23 = scalar_lea.sflag [#allocation4], %s1483_s25 }
  0x5a   : > { %742 = vmatpush1.bf16.msra.mxu1 %v1096_v3  ;;  %v256_v15 = vpack.c.bf16 %v232_v13, %v230_v12  ;;  %v1112_v17 = vld [vmem:[#allocation5 + $0x4] ss:$8 sps:$4 sm:$0xff]   ;;  %v1114_v18 = vld [vmem:[#allocation5] ss:$8 sps:$4 sm:$0xff]   ;;  %v1115_v19 = vld [vmem:[#allocation5 + $0xf4] ss:$8 sps:$4 sm:$0xff]  }
  0x5b   : > { %743 = vmatprep.subr.bf16.mxu1 %v1097_v4  ;;  %v1117_v20 = vld [vmem:[#allocation5 + $0xf0] ss:$8 sps:$4 sm:$0xff]   ;;  %v1118_v21 = vld [vmem:[#allocation5 + $0xe4] ss:$8 sps:$4 sm:$0xff]   ;;  %v1120_v22 = vld [vmem:[#allocation5 + $0xe0] ss:$8 sps:$4 sm:$0xff]  }
  0x5c   : > { %461 = vmatprep.mubr.bf16.mxu0 %v256_v15  ;;  %v1121_v23 = vld [vmem:[#allocation5 + $0xd4] ss:$8 sps:$4 sm:$0xff]   ;;  %v1123_v24 = vld [vmem:[#allocation5 + $0xd0] ss:$8 sps:$4 sm:$0xff]   ;;  %v1124_v25 = vld [vmem:[#allocation5 + $0xc4] ss:$8 sps:$4 sm:$0xff]  }
  0x5d   : > { %v1126_v26 = vld [vmem:[#allocation5 + $0xc0] ss:$8 sps:$4 sm:$0xff]   ;;  %v1127_v27 = vld [vmem:[#allocation5 + $0xb4] ss:$8 sps:$4 sm:$0xff]   ;;  %v1129_v28 = vld [vmem:[#allocation5 + $0xb0] ss:$8 sps:$4 sm:$0xff]  }
  0x5e   : > { %432 = vmatpush1.bf16.xpose.msra.mxu0 %v1096_v3  ;;  %744 = vmatpush1.bf16.msra.mxu1 %v1099_v5  ;;  %v1130_v29 = vld [vmem:[#allocation5 + $0xa4] ss:$8 sps:$4 sm:$0xff]   ;;  %v1132_v30 = vld [vmem:[#allocation5 + $0xa0] ss:$8 sps:$4 sm:$0xff]   ;;  %v1133_v31 = vld [vmem:[#allocation5 + $0x94] ss:$8 sps:$4 sm:$0xff]  }
  0x5f   : > { %433 = vmatprep.subr.bf16.mxu0 %v1097_v4  ;;  %745 = vmatprep.subr.bf16.mxu1 %v1100_v6  ;;  %v1135_v32 = vld [vmem:[#allocation5 + $0x90] ss:$8 sps:$4 sm:$0xff]   ;;  %v1136_v33 = vld [vmem:[#allocation5 + $0x84] ss:$8 sps:$4 sm:$0xff]   ;;  %v1138_v34 = vld [vmem:[#allocation5 + $0x80] ss:$8 sps:$4 sm:$0xff]  }
  0x60   : > { %v231_v36 = vld [vmem:[%s1489_s29 + $0x10] sm:$0xff]  ;;  %v234_v37 = vld [vmem:[%s1489_s29 + $0x28] sm:$0xff]  ;;  %v236_v38 = vld [vmem:[%s1489_s29 + $0x38] sm:$0xff]  ;;  %p1820_p4 = scmp.ne.s32.totalorder %s1816_s21, 0 }
  0x61   : > { %v255_v39 = vpack.c.bf16 %v231_v36, %v229_v35  ;;  %v258_v40 = vpack.c.bf16 %v236_v38, %v234_v37  ;;  %v233_v41 = vld [vmem:[%s1489_s29 + $0x20] sm:$0xff]  ;;  %v235_v42 = vld [vmem:[%s1489_s29 + $0x30] sm:$0xff]  ;;  %v238_v43 = vld [vmem:[%s1489_s29 + $0x48] sm:$0xff]  ;;  %s874_s7 = smul.u32 (%p1820_p4), 13, %s1384_s13 }
  0x62   : > { %746 = vmatpush1.bf16.msra.mxu1 %v1102_v7  ;;  %v240_v44 = vld [vmem:[%s1489_s29 + $0x58] sm:$0xff]  ;;  %v257_v45 = vpack.c.bf16 %v235_v42, %v233_v41  ;;  %v237_v47 = vld [vmem:[%s1489_s29 + $0x40] sm:$0xff]  ;;  %v239_v48 = vld [vmem:[%s1489_s29 + $0x50] sm:$0xff] }
  0x63   : > { %747 = vmatprep.subr.bf16.mxu1 %v1103_v8  ;;  %v260_v46 = vpack.c.bf16 %v240_v44, %v238_v43  ;;  %v242_v49 = vld [vmem:[%s1489_s29 + $0x68] sm:$0xff]  ;;  %v244_v50 = vld [vmem:[%s1489_s29 + $0x78] sm:$0xff]  ;;  %v259_v51 = vpack.c.bf16 %v239_v48, %v237_v47  ;;  %v241_v53 = vld [vmem:[%s1489_s29 + $0x60] sm:$0xff]  ;;  %s875_s14 = ssub.s32 (%p1820_p4), 25, %s874_s7 }
  0x64   : > { %v262_v52 = vpack.c.bf16 %v244_v50, %v242_v49  ;;  %v243_v54 = vld [vmem:[%s1489_s29 + $0x70] sm:$0xff]  ;;  %v246_v55 = vld [vmem:[%s1489_s29 + $0x88] sm:$0xff]  ;;  %v248_v56 = vld [vmem:[%s1489_s29 + $0x98] sm:$0xff]  ;;  %p876_p13 = scmp.lt.s32.totalorder (%p1820_p4), %s875_s14, 13 }
  0x65   : > { %v261_v57 = vpack.c.bf16 %v243_v54, %v241_v53  ;;  %v264_v58 = vpack.c.bf16 %v248_v56, %v246_v55  ;;  %v245_v59 = vld [vmem:[%s1489_s29 + $0x80] sm:$0xff]  ;;  %v247_v60 = vld [vmem:[%s1489_s29 + $0x90] sm:$0xff]  ;;  %v250_v61 = vld [vmem:[%s1489_s29 + $0xa8] sm:$0xff] }
  0x66   : > { %434 = vmatpush1.bf16.xpose.msra.mxu0 %v1099_v5  ;;  %748 = vmatpush1.bf16.msra.mxu1 %v1105_v9  ;;  %v252_v62 = vld [vmem:[%s1489_s29 + $0xb8] sm:$0xff]  ;;  %v263_v63 = vpack.c.bf16 %v247_v60, %v245_v59  ;;  %v249_v1 = vld [vmem:[%s1489_s29 + $0xa0] sm:$0xff]  ;;  %v251_v2 = vld [vmem:[%s1489_s29 + $0xb0] sm:$0xff] }
  0x67   : > { %435 = vmatprep.subr.bf16.mxu0 %v1100_v6  ;;  %749 = vmatprep.subr.bf16.mxu1 %v1106_v10  ;;  %v266_v0 = vpack.c.bf16 %v252_v62, %v250_v61  ;;  %v254_v3 = vld [vmem:[%s1489_s29 + $0xc8] sm:$0xff]  ;;  %v265_v4 = vpack.c.bf16 %v251_v2, %v249_v1  ;;  %v253_v6 = vld [vmem:[%s1489_s29 + $0xc0] sm:$0xff] }
  0x68   : > { %v268_v5 = vpack.c.bf16 %v254_v3, %v254_v3 }
  0x6a   : > { %750 = vmatpush1.bf16.msra.mxu1 %v1108_v11 }
  0x6b   : > { %751 = vmatprep.subr.bf16.mxu1 %v1109_v14 }
  0x6e   : > { %436 = vmatpush1.bf16.xpose.msra.mxu0 %v1102_v7  ;;  %752 = vmatpush1.bf16.msra.mxu1 %v1111_v16  ;;  %v267_v7 = vpack.c.bf16 %v253_v6, %v253_v6 }
  0x6f   : > { %437 = vmatprep.subr.bf16.mxu0 %v1103_v8  ;;  %753 = vmatprep.subr.bf16.mxu1 %v1112_v17 }
  0x72   : > { %754 = vmatpush1.bf16.msra.mxu1 %v1114_v18 }
  0x73   : > { %755 = vmatprep.subr.bf16.mxu1 %v1115_v19 }
  0x76   : > { %438 = vmatpush1.bf16.xpose.msra.mxu0 %v1105_v9  ;;  %756 = vmatpush2.bf16.msra.mxu1 %v1117_v20 }
  0x77   : > { %439 = vmatprep.subr.bf16.mxu0 %v1106_v10  ;;  %757 = vmatprep.subr.bf16.mxu1 %v1118_v21 }
  0x7a   : > { %758 = vmatpush2.bf16.msra.mxu1 %v1120_v22 }
  0x7b   : > { %759 = vmatprep.subr.bf16.mxu1 %v1121_v23 }
  0x7e   : > { %440 = vmatpush1.bf16.xpose.msra.mxu0 %v1108_v11  ;;  %760 = vmatpush2.bf16.msra.mxu1 %v1123_v24 }
  0x7f   : > { %441 = vmatprep.subr.bf16.mxu0 %v1109_v14  ;;  %761 = vmatprep.subr.bf16.mxu1 %v1124_v25 }
  0x82   : > { %762 = vmatpush2.bf16.msra.mxu1 %v1126_v26 }
  0x83   : > { %763 = vmatprep.subr.bf16.mxu1 %v1127_v27 }
  0x86   : > { %442 = vmatpush1.bf16.xpose.msra.mxu0 %v1111_v16  ;;  %764 = vmatpush2.bf16.msra.mxu1 %v1129_v28 }
  0x87   : > { %443 = vmatprep.subr.bf16.mxu0 %v1112_v17  ;;  %765 = vmatprep.subr.bf16.mxu1 %v1130_v29 }
  0x8a   : > { %766 = vmatpush2.bf16.msra.mxu1 %v1132_v30 }
  0x8b   : > { %767 = vmatprep.subr.bf16.mxu1 %v1133_v31 }
  0x8e   : > { %444 = vmatpush1.bf16.xpose.msra.mxu0 %v1114_v18  ;;  %768 = vmatpush2.bf16.msra.mxu1 %v1135_v32 }
  0x8f   : > { %445 = vmatprep.subr.bf16.mxu0 %v1115_v19  ;;  %769 = vmatprep.subr.bf16.mxu1 %v1136_v33 }
  0x92   : > { %770 = vmatpush2.bf16.msra.mxu1 %v1138_v34 }
  0x96   : > { %446 = vmatpush2.bf16.xpose.msra.mxu0 %v1117_v20 }
  0x97   : > { %447 = vmatprep.subr.bf16.mxu0 %v1118_v21 }
  0x9e   : > { %448 = vmatpush2.bf16.xpose.msra.mxu0 %v1120_v22 }
  0x9f   : > { %449 = vmatprep.subr.bf16.mxu0 %v1121_v23 }
  0xa6   : > { %450 = vmatpush2.bf16.xpose.msra.mxu0 %v1123_v24 }
  0xa7   : > { %451 = vmatprep.subr.bf16.mxu0 %v1124_v25 }
  0xae   : > { %452 = vmatpush2.bf16.xpose.msra.mxu0 %v1126_v26 }
  0xaf   : > { %453 = vmatprep.subr.bf16.mxu0 %v1127_v27 }
  0xb6   : > { %454 = vmatpush2.bf16.xpose.msra.mxu0 %v1129_v28 }
  0xb7   : > { %455 = vmatprep.subr.bf16.mxu0 %v1130_v29 }
  0xbe   : > { %456 = vmatpush2.bf16.xpose.msra.mxu0 %v1132_v30 }
  0xbf   : > { %457 = vmatprep.subr.bf16.mxu0 %v1133_v31 }
  0xc6   : > { %458 = vmatpush2.bf16.xpose.msra.mxu0 %v1135_v32 }
  0xc7   : > { %459 = vmatprep.subr.bf16.mxu0 %v1136_v33 }
  0xce   : > { %460 = vmatpush2.bf16.xpose.msra.mxu0 %v1138_v34 }
  0xd5   : > { %462 = vmatmul.mubr.bf16.vlgmr.msra.gmra.mxu0 %v255_v39 }
  0xd6   : > { %471 = vmatprep.mubr.bf16.mxu0 %v258_v40 }
  0xdd   : > { %472 = vmatmul.mubr.bf16.gmra.mxu0 %v257_v45 }
  0xde   : > { %481 = vmatprep.mubr.bf16.mxu0 %v260_v46 }
  0xe5   : > { %482 = vmatmul.mubr.bf16.gmra.mxu0 %v259_v51 }
  0xe6   : > { %491 = vmatprep.mubr.bf16.mxu0 %v262_v52 }
  0xed   : > { %492 = vmatmul.mubr.bf16.gmra.mxu0 %v261_v57 }
  0xee   : > { %501 = vmatprep.mubr.bf16.mxu0 %v264_v58 }
  0xf5   : > { %502 = vmatmul.mubr.bf16.gmra.mxu0 %v263_v63 }
  0xf6   : > { %511 = vmatprep.mubr.bf16.mxu0 %v266_v0 }
  0xfd   : > { %512 = vmatmul.mubr.bf16.gmra.mxu0 %v265_v4 }
  0xfe   : > { %521 = vmatprep.mubr.bf16.mxu0 %v268_v5 }
 0x105   : > { %522 = vmatmul.mubr.bf16.gmra.mxu0 %v267_v7 }
 0x195   : > { %v463_v8 = vpop.f32.mrf.mxu0 }
 0x197   : > { %v465_v9 = vpop.f32.mrf.mxu0 }
 0x198   : > { %v530_v10 = vmax.f32 %v463_v8, %v465_v9 }
 0x199   : > { %v467_v11 = vpop.f32.mrf.mxu0 }
 0x19a   : > { %531 = vmax.xlane.f32.xlu0 %v530_v10 }
 0x19b   : > { %v469_v12 = vpop.f32.mrf.mxu0 }
 0x19c   : > { %v533_v13 = vmax.f32 %v467_v11, %v469_v12 }
 0x19d   : > { %v1525_v14 = vpop.f32.mrf.mxu0 }
 0x19e   : > { %534 = vmax.xlane.f32.xlu0 %v533_v13 }
 0x19f   : > { %v1527_v15 = vpop.f32.mrf.mxu0 }
 0x1a0   : > { %v536_v16 = vmax.f32 %v1525_v14, %v1527_v15 }
 0x1a1   : > { %v1531_v17 = vpop.f32.mrf.mxu0 }
 0x1a2   : > { %537 = vmax.xlane.f32.xlu1 %v536_v16 }
 0x1a3   : > { %v1533_v18 = vpop.f32.mrf.mxu0 }
 0x1a4   : > { %v539_v19 = vmax.f32 %v1531_v17, %v1533_v18 }
 0x1a5   : > { %v1537_v20 = vpop.f32.mrf.mxu0 }
 0x1a6   : > { %540 = vmax.xlane.f32.xlu1 %v539_v19 }
 0x1a7   : > { %v1539_v21 = vpop.f32.mrf.mxu0 }
 0x1a8   : > { %v542_v22 = vmax.f32 %v1537_v20, %v1539_v21 }
 0x1a9   : > { %v1543_v23 = vpop.f32.mrf.mxu0 }
 0x1aa   : > { %543 = vmax.xlane.f32.xlu0 %v542_v22 }
 0x1ab   : > { %v1545_v24 = vpop.f32.mrf.mxu0 }
 0x1ac   : > { %v545_v25 = vmax.f32 %v1543_v23, %v1545_v24 }
 0x1ad   : > { %v1549_v26 = vpop.f32.mrf.mxu0 }
 0x1ae   : > { %546 = vmax.xlane.f32.xlu1 %v545_v25 }
 0x1af   : > { %v1551_v27 = vpop.f32.mrf.mxu0 }
 0x1b0   : > { %v548_v28 = vmax.f32 %v1549_v26, %v1551_v27 }
 0x1b1   : > { %v1555_v29 = vpop.f32.mrf.mxu0 }
 0x1b2   : > { %549 = vmax.xlane.f32.xlu0 %v548_v28 }
 0x1b3   : > { %v1557_v30 = vpop.f32.mrf.mxu0 }
 0x1b4   : > { %v551_v31 = vmax.f32 %v1555_v29, %v1557_v30 }
 0x1b5   : > { %v1561_v32 = vpop.f32.mrf.mxu0 }
 0x1b6   : > { %552 = vmax.xlane.f32.xlu1 %v551_v31 }
 0x1b7   : > { %v1563_v33 = vpop.f32.mrf.mxu0 }
 0x1b8   : > { %v554_v34 = vmax.f32 %v1561_v32, %v1563_v33 }
 0x1b9   : > { %v1567_v35 = vpop.f32.mrf.mxu0 }
 0x1ba   : > { %555 = vmax.xlane.f32.xlu0 %v554_v34 }
 0x1bb   : > { %v1569_v36 = vpop.f32.mrf.mxu0 }
 0x1bc   : > { %v557_v37 = vmax.f32 %v1567_v35, %v1569_v36 }
 0x1bd   : > { %v1573_v38 = vpop.f32.mrf.mxu0 }
 0x1be   : > { %558 = vmax.xlane.f32.xlu1 %v557_v37 }
 0x1bf   : > { %v1575_v39 = vpop.f32.mrf.mxu0 }
 0x1c0   : > { %v560_v40 = vmax.f32 %v1573_v38, %v1575_v39 }
 0x1c1   : > { %v1579_v41 = vpop.f32.mrf.mxu0 }
 0x1c2   : > { %561 = vmax.xlane.f32.xlu0 %v560_v40 }
 0x1c3   : > { %v1581_v42 = vpop.f32.mrf.mxu0 }
 0x1c4   : > { %v563_v43 = vmax.f32 %v1579_v41, %v1581_v42 }
 0x1c5   : > { %v1585_v44 = vpop.f32.mrf.mxu0 }
 0x1c6   : > { %564 = vmax.xlane.f32.xlu1 %v563_v43 }
 0x1c7   : > { %v1587_v45 = vpop.f32.mrf.mxu0 }
 0x1c8   : > { %v566_v46 = vmax.f32 %v1585_v44, %v1587_v45 }
 0x1c9   : > { %v527_v47 = vpop.f32.mrf.mxu0 }
 0x1ca   : > { %567 = vmax.xlane.f32.xlu0 %v566_v46 }
 0x1cb   : > { %v528_v48 = vpop.f32.mrf.mxu0 }
 0x223   : > { %v532_v49 = vpop.xlane.xlu0 %531 }
 0x224   : > { %v569_v50 = vsub.f32 %v463_v8, %v532_v49  ;;  %v570_v51 = vsub.f32 %v465_v9, %v532_v49 }
 0x226   : > { %v595_v52 = vmul.f32 1.442695, %v569_v50  ;;  %v597_v53 = vmul.f32 1.442695, %v570_v51 }
 0x227   : > { %v535_v54 = vpop.xlane.xlu0 %534 }
 0x228   : > { %1139 = vpow2.f32 %v595_v52  ;;  %v571_v55 = vsub.f32 %v467_v11, %v535_v54  ;;  %v572_v56 = vsub.f32 %v469_v12, %v535_v54 }
 0x229   : > { %1141 = vpow2.f32 %v597_v53 }
 0x22a   : > { %v599_v57 = vmul.f32 1.442695, %v571_v55  ;;  %v601_v58 = vmul.f32 1.442695, %v572_v56 }
 0x22b   : > { %v538_v59 = vpop.xlane.xlu1 %537 }
 0x22c   : > { %1143 = vpow2.f32 %v599_v57  ;;  %v573_v60 = vsub.f32 %v1525_v14, %v538_v59  ;;  %v574_v61 = vsub.f32 %v1527_v15, %v538_v59 }
 0x22d   : > { %1145 = vpow2.f32 %v601_v58 }
 0x22e   : > { %v603_v62 = vmul.f32 1.442695, %v573_v60  ;;  %v605_v63 = vmul.f32 1.442695, %v574_v61 }
 0x22f   : > { %v541_v0 = vpop.xlane.xlu1 %540 }
 0x230   : > { %1147 = vpow2.f32 %v603_v62  ;;  %v575_v1 = vsub.f32 %v1531_v17, %v541_v0  ;;  %v576_v2 = vsub.f32 %v1533_v18, %v541_v0 }
 0x231   : > { %1149 = vpow2.f32 %v605_v63 }
 0x232   : > { %v607_v3 = vmul.f32 1.442695, %v575_v1  ;;  %v609_v4 = vmul.f32 1.442695, %v576_v2 }
 0x233   : > { %v544_v5 = vpop.xlane.xlu0 %543 }
 0x234   : > { %1151 = vpow2.f32 %v607_v3  ;;  %v577_v6 = vsub.f32 %v1537_v20, %v544_v5  ;;  %v578_v7 = vsub.f32 %v1539_v21, %v544_v5 }
 0x235   : > { %v1597_v8 = vpop.eup %1139  ;;  %1153 = vpow2.f32 %v609_v4 }
 0x236   : > { %v1599_v9 = vpop.eup %1141  ;;  %v611_v10 = vmul.f32 1.442695, %v577_v6  ;;  %v613_v11 = vmul.f32 1.442695, %v578_v7 }
 0x237   : > { %v547_v12 = vpop.xlane.xlu1 %546  ;;  %v647_v13 = vadd.f32 %v1599_v9, %v1597_v8 }
 0x238   : > { %1155 = vpow2.f32 %v611_v10  ;;  %v579_v14 = vsub.f32 %v1543_v23, %v547_v12  ;;  %v580_v15 = vsub.f32 %v1545_v24, %v547_v12 }
 0x239   : > { %v1605_v16 = vpop.eup %1143  ;;  %1157 = vpow2.f32 %v613_v11  ;;  %648 = vadd.xlane.f32.xlu1 %v647_v13 }
 0x23a   : > { %v1607_v17 = vpop.eup %1145  ;;  %v615_v18 = vmul.f32 1.442695, %v579_v14  ;;  %v617_v19 = vmul.f32 1.442695, %v580_v15 }
 0x23b   : > { %v550_v20 = vpop.xlane.xlu0 %549  ;;  %v650_v21 = vadd.f32 %v1607_v17, %v1605_v16 }
 0x23c   : > { %1159 = vpow2.f32 %v615_v18  ;;  %v581_v22 = vsub.f32 %v1549_v26, %v550_v20  ;;  %v582_v25 = vsub.f32 %v1551_v27, %v550_v20 }
 0x23d   : > { %v1613_v23 = vpop.eup %1147  ;;  %1161 = vpow2.f32 %v617_v19  ;;  %651 = vadd.xlane.f32.xlu0 %v650_v21 }
 0x23e   : > { %v1615_v24 = vpop.eup %1149  ;;  %v619_v28 = vmul.f32 1.442695, %v581_v22  ;;  %v621_v31 = vmul.f32 1.442695, %v582_v25 }
 0x23f   : > { %v553_v34 = vpop.xlane.xlu1 %552  ;;  %v653_v37 = vadd.f32 %v1615_v24, %v1613_v23 }
 0x240   : > { %1163 = vpow2.f32 %v619_v28  ;;  %v583_v40 = vsub.f32 %v1555_v29, %v553_v34  ;;  %v584_v43 = vsub.f32 %v1557_v30, %v553_v34 }
 0x241   : > { %v1621_v26 = vpop.eup %1151  ;;  %1165 = vpow2.f32 %v621_v31  ;;  %654 = vadd.xlane.f32.xlu1 %v653_v37 }
 0x242   : > { %v1623_v27 = vpop.eup %1153  ;;  %v623_v46 = vmul.f32 1.442695, %v583_v40  ;;  %v625_v47 = vmul.f32 1.442695, %v584_v43 }
 0x243   : > { %v556_v48 = vpop.xlane.xlu0 %555  ;;  %v656_v49 = vadd.f32 %v1623_v27, %v1621_v26 }
 0x244   : > { %1167 = vpow2.f32 %v623_v46  ;;  %v585_v50 = vsub.f32 %v1561_v32, %v556_v48  ;;  %v586_v51 = vsub.f32 %v1563_v33, %v556_v48 }
 0x245   : > { %v1629_v29 = vpop.eup %1155  ;;  %1169 = vpow2.f32 %v625_v47  ;;  %657 = vadd.xlane.f32.xlu0 %v656_v49 }
 0x246   : > { %v1631_v30 = vpop.eup %1157  ;;  %v627_v52 = vmul.f32 1.442695, %v585_v50  ;;  %v629_v53 = vmul.f32 1.442695, %v586_v51 }
 0x247   : > { %v559_v54 = vpop.xlane.xlu1 %558  ;;  %v659_v55 = vadd.f32 %v1631_v30, %v1629_v29 }
 0x248   : > { %1171 = vpow2.f32 %v627_v52  ;;  %v587_v56 = vsub.f32 %v1567_v35, %v559_v54  ;;  %v588_v57 = vsub.f32 %v1569_v36, %v559_v54 }
 0x249   : > { %v1637_v32 = vpop.eup %1159  ;;  %1173 = vpow2.f32 %v629_v53  ;;  %660 = vadd.xlane.f32.xlu1 %v659_v55 }
 0x24a   : > { %v1639_v33 = vpop.eup %1161  ;;  %v631_v58 = vmul.f32 1.442695, %v587_v56  ;;  %v633_v59 = vmul.f32 1.442695, %v588_v57 }
 0x24b   : > { %v562_v60 = vpop.xlane.xlu0 %561  ;;  %v662_v61 = vadd.f32 %v1639_v33, %v1637_v32 }
 0x24c   : > { %1175 = vpow2.f32 %v631_v58  ;;  %v589_v62 = vsub.f32 %v1573_v38, %v562_v60  ;;  %v590_v63 = vsub.f32 %v1575_v39, %v562_v60 }
 0x24d   : > { %v1645_v35 = vpop.eup %1163  ;;  %1177 = vpow2.f32 %v633_v59  ;;  %663 = vadd.xlane.f32.xlu0 %v662_v61 }
 0x24e   : > { %v1647_v36 = vpop.eup %1165  ;;  %v635_v0 = vmul.f32 1.442695, %v589_v62  ;;  %v637_v1 = vmul.f32 1.442695, %v590_v63 }
 0x24f   : > { %v565_v2 = vpop.xlane.xlu1 %564  ;;  %v665_v3 = vadd.f32 %v1647_v36, %v1645_v35 }
 0x250   : > { %1179 = vpow2.f32 %v635_v0  ;;  %v591_v4 = vsub.f32 %v1579_v41, %v565_v2  ;;  %v592_v5 = vsub.f32 %v1581_v42, %v565_v2 }
 0x251   : > { %v1653_v38 = vpop.eup %1167  ;;  %1181 = vpow2.f32 %v637_v1  ;;  %666 = vadd.xlane.f32.xlu1 %v665_v3 }
 0x252   : > { %v1655_v39 = vpop.eup %1169  ;;  %v639_v6 = vmul.f32 1.442695, %v591_v4  ;;  %v641_v7 = vmul.f32 1.442695, %v592_v5 }
 0x253   : > { %v568_v10 = vpop.xlane.xlu0 %567  ;;  %v668_v11 = vadd.f32 %v1655_v39, %v1653_v38 }
 0x254   : > { %1183 = vpow2.f32 %v639_v6  ;;  %v593_v12 = vsub.f32 %v1585_v44, %v568_v10  ;;  %v594_v13 = vsub.f32 %v1587_v45, %v568_v10 }
 0x255   : > { %v1661_v41 = vpop.eup %1171  ;;  %1185 = vpow2.f32 %v641_v7  ;;  %669 = vadd.xlane.f32.xlu0 %v668_v11 }
 0x256   : > { %v1663_v42 = vpop.eup %1173  ;;  %v643_v14 = vmul.f32 1.442695, %v593_v12  ;;  %v645_v15 = vmul.f32 1.442695, %v594_v13 }
 0x257   : > { %v671_v18 = vadd.f32 %v1663_v42, %v1661_v41 }
 0x258   : > { %1187 = vpow2.f32 %v643_v14 }
 0x259   : > { %v1667_v19 = vpop.eup %1175  ;;  %1189 = vpow2.f32 %v645_v15  ;;  %672 = vadd.xlane.f32.xlu1 %v671_v18 }
 0x25a   : > { %v1669_v20 = vpop.eup %1177 }
 0x25b   : > { %v674_v44 = vadd.f32 %v1669_v20, %v1667_v19 }
 0x25d   : > { %v1673_v45 = vpop.eup %1179  ;;  %675 = vadd.xlane.f32.xlu0 %v674_v44 }
 0x25e   : > { %v1675_v21 = vpop.eup %1181 }
 0x25f   : > { %v677_v22 = vadd.f32 %v1675_v21, %v1673_v45 }
 0x261   : > { %v1679_v25 = vpop.eup %1183  ;;  %678 = vadd.xlane.f32.xlu1 %v677_v22 }
 0x262   : > { %v1681_v28 = vpop.eup %1185 }
 0x263   : > { %v680_v31 = vadd.f32 %v1681_v28, %v1679_v25 }
 0x265   : > { %v1685_v34 = vpop.eup %1187  ;;  %681 = vadd.xlane.f32.xlu0 %v680_v31 }
 0x266   : > { %v1687_v37 = vpop.eup %1189 }
 0x267   : > { %v683_v40 = vadd.f32 %v1687_v37, %v1685_v34 }
 0x269   : > { %684 = vadd.xlane.f32.xlu1 %v683_v40 }
 0x2c2   : > { %v649_v43 = vpop.xlane.xlu1 %648 }
 0x2c3   : > { %1191 = vrcp.f32 %v649_v43 }
 0x2c6   : > { %v652_v46 = vpop.xlane.xlu0 %651 }
 0x2c7   : > { %1193 = vrcp.f32 %v652_v46 }
 0x2ca   : > { %v655_v47 = vpop.xlane.xlu1 %654 }
 0x2cb   : > { %1195 = vrcp.f32 %v655_v47 }
 0x2ce   : > { %v658_v48 = vpop.xlane.xlu0 %657 }
 0x2cf   : > { %1197 = vrcp.f32 %v658_v48 }
 0x2d0   : > { %v1192_v49 = vpop.eup %1191 }
 0x2d1   : > { %v700_v52 = vmul.f32 %v1192_v49, %v1599_v9  ;;  %v699_v54 = vmul.f32 %v1192_v49, %v1597_v8 }
 0x2d2   : > { %v661_v50 = vpop.xlane.xlu1 %660 }
 0x2d3   : > { %1199 = vrcp.f32 %v661_v50 }
 0x2d4   : > { %v1194_v51 = vpop.eup %1193 }
 0x2d5   : > { %v702_v53 = vmul.f32 %v1194_v51, %v1607_v17  ;;  %v701_v55 = vmul.f32 %v1194_v51, %v1605_v16 }
 0x2d6   : > { %v664_v56 = vpop.xlane.xlu0 %663 }
 0x2d7   : > { %1201 = vrcp.f32 %v664_v56  ;;  %v726_v57 = vpack.c.bf16 %v702_v53, %v700_v52  ;;  %v725_v58 = vpack.c.bf16 %v701_v55, %v699_v54 }
 0x2d8   : > { %v1196_v59 = vpop.eup %1195 }
 0x2d9   : > { %771 = vmatprep.mubr.bf16.mxu1 %v726_v57  ;;  %v704_v62 = vmul.f32 %v1196_v59, %v1615_v24  ;;  %v703_v17 = vmul.f32 %v1196_v59, %v1613_v23 }
 0x2da   : > { %v667_v60 = vpop.xlane.xlu1 %666  ;;  %772 = vmatmul.mubr.bf16.vlgmr.msra.gmra.mxu1 %v725_v58 }
 0x2db   : > { %1203 = vrcp.f32 %v667_v60 }
 0x2dc   : > { %v1198_v61 = vpop.eup %1197 }
 0x2dd   : > { %v706_v9 = vmul.f32 %v1198_v61, %v1623_v27  ;;  %v705_v8 = vmul.f32 %v1198_v61, %v1621_v26 }
 0x2de   : > { %v670_v63 = vpop.xlane.xlu0 %669 }
 0x2df   : > { %1205 = vrcp.f32 %v670_v63  ;;  %v728_v16 = vpack.c.bf16 %v706_v9, %v704_v62  ;;  %v727_v0 = vpack.c.bf16 %v705_v8, %v703_v17 }
 0x2e0   : > { %v1200_v1 = vpop.eup %1199 }
 0x2e1   : > { %781 = vmatprep.mubr.bf16.mxu1 %v728_v16  ;;  %v708_v4 = vmul.f32 %v1200_v1, %v1631_v30  ;;  %v707_v27 = vmul.f32 %v1200_v1, %v1629_v29 }
 0x2e2   : > { %v673_v2 = vpop.xlane.xlu1 %672  ;;  %782 = vmatmul.mubr.bf16.gmra.mxu1 %v727_v0 }
 0x2e3   : > { %1207 = vrcp.f32 %v673_v2 }
 0x2e4   : > { %v1202_v3 = vpop.eup %1201 }
 0x2e5   : > { %v710_v24 = vmul.f32 %v1202_v3, %v1639_v33  ;;  %v709_v23 = vmul.f32 %v1202_v3, %v1637_v32 }
 0x2e6   : > { %v676_v5 = vpop.xlane.xlu0 %675 }
 0x2e7   : > { %1209 = vrcp.f32 %v676_v5  ;;  %v730_v26 = vpack.c.bf16 %v710_v24, %v708_v4  ;;  %v729_v6 = vpack.c.bf16 %v709_v23, %v707_v27 }
 0x2e8   : > { %v1204_v7 = vpop.eup %1203 }
 0x2e9   : > { %791 = vmatprep.mubr.bf16.mxu1 %v730_v26  ;;  %v712_v12 = vmul.f32 %v1204_v7, %v1647_v36  ;;  %v711_v33 = vmul.f32 %v1204_v7, %v1645_v35 }
 0x2ea   : > { %v679_v10 = vpop.xlane.xlu1 %678  ;;  %792 = vmatmul.mubr.bf16.gmra.mxu1 %v729_v6 }
 0x2eb   : > { %1211 = vrcp.f32 %v679_v10 }
 0x2ec   : > { %v1206_v11 = vpop.eup %1205 }
 0x2ed   : > { %v714_v30 = vmul.f32 %v1206_v11, %v1655_v39  ;;  %v713_v29 = vmul.f32 %v1206_v11, %v1653_v38 }
 0x2ee   : > { %v682_v13 = vpop.xlane.xlu0 %681 }
 0x2ef   : > { %1213 = vrcp.f32 %v682_v13  ;;  %v732_v32 = vpack.c.bf16 %v714_v30, %v712_v12  ;;  %v731_v14 = vpack.c.bf16 %v713_v29, %v711_v33 }
 0x2f0   : > { %v1208_v15 = vpop.eup %1207 }
 0x2f1   : > { %801 = vmatprep.mubr.bf16.mxu1 %v732_v32  ;;  %v716_v22 = vmul.f32 %v1208_v15, %v1663_v42  ;;  %v715_v39 = vmul.f32 %v1208_v15, %v1661_v41 }
 0x2f2   : > { %v685_v18 = vpop.xlane.xlu1 %684  ;;  %802 = vmatmul.mubr.bf16.gmra.mxu1 %v731_v14 }
 0x2f3   : > { %1215 = vrcp.f32 %v685_v18 }
 0x2f4   : > { %v1210_v44 = vpop.eup %1209 }
 0x2f5   : > { %v718_v36 = vmul.f32 %v1210_v44, %v1669_v20  ;;  %v717_v35 = vmul.f32 %v1210_v44, %v1667_v19 }
 0x2f7   : > { %v734_v31 = vpack.c.bf16 %v718_v36, %v716_v22  ;;  %v733_v38 = vpack.c.bf16 %v717_v35, %v715_v39 }
 0x2f8   : > { %v1212_v40 = vpop.eup %1211 }
 0x2f9   : > { %811 = vmatprep.mubr.bf16.mxu1 %v734_v31  ;;  %v720_v46 = vmul.f32 %v1212_v40, %v1675_v21  ;;  %v719_v48 = vmul.f32 %v1212_v40, %v1673_v45 }
 0x2fa   : > { %812 = vmatmul.mubr.bf16.gmra.mxu1 %v733_v38 }
 0x2fc   : > { %v1214_v43 = vpop.eup %1213 }
 0x2fd   : > { %v722_v47 = vmul.f32 %v1214_v43, %v1681_v28  ;;  %v721_v42 = vmul.f32 %v1214_v43, %v1679_v25 }
 0x2ff   : > { %v736_v20 = vpack.c.bf16 %v722_v47, %v720_v46  ;;  %v735_v49 = vpack.c.bf16 %v721_v42, %v719_v48 }
 0x300   : > { %v1216_v41 = vpop.eup %1215 }
 0x301   : > { %821 = vmatprep.mubr.bf16.mxu1 %v736_v20  ;;  %v724_v19 = vmul.f32 %v1216_v41, %v1687_v37  ;;  %v723_v51 = vmul.f32 %v1216_v41, %v1685_v34 }
 0x302   : > { %822 = vmatmul.mubr.bf16.gmra.mxu1 %v735_v49 }
 0x303   : > { %v738_v50 = vpack.c.bf16 %v724_v19, %v724_v19  ;;  %v737_v52 = vpack.c.bf16 %v723_v51, %v723_v51 }
 0x305   : > { %831 = vmatprep.mubr.bf16.mxu1 %v738_v50 }
 0x30a   : > { %832 = vmatmul.mubr.bf16.gmra.mxu1 %v737_v52 }
 0x39a   : > { %v773_v21 = vpop.f32.mrf.mxu1 }
 0x39b   : > { %840 = vst [vmem:[%s1719_s20] sm:$0xff] %v773_v21 }
 0x39c   : > { %v775_v45 = vpop.f32.mrf.mxu1 }
 0x39d   : > { %841 = vst [vmem:[%s1719_s20 + $0x8] sm:$0xff] %v775_v45 }
 0x39e   : > { %v777_v25 = vpop.f32.mrf.mxu1 }
 0x39f   : > { %842 = vst [vmem:[%s1719_s20 + $0x10] sm:$0xff] %v777_v25 }
 0x3a0   : > { %v779_v28 = vpop.f32.mrf.mxu1 }
 0x3a1   : > { %843 = vst [vmem:[%s1719_s20 + $0x18] sm:$0xff] %v779_v28 }
 0x3a2   : > { %v783_v34 = vpop.f32.mrf.mxu1 }
 0x3a3   : > { %844 = vst [vmem:[%s1719_s20 + $0x20] sm:$0xff] %v783_v34 }
 0x3a4   : > { %v785_v37 = vpop.f32.mrf.mxu1 }
 0x3a5   : > { %845 = vst [vmem:[%s1719_s20 + $0x28] sm:$0xff] %v785_v37 }
 0x3a6   : > { %v787_v53 = vpop.f32.mrf.mxu1 }
 0x3a7   : > { %846 = vst [vmem:[%s1719_s20 + $0x30] sm:$0xff] %v787_v53 }
 0x3a8   : > { %v789_v54 = vpop.f32.mrf.mxu1 }
 0x3a9   : > { %847 = vst [vmem:[%s1719_s20 + $0x38] sm:$0xff] %v789_v54 }
 0x3aa   : > { %v793_v55 = vpop.f32.mrf.mxu1 }
 0x3ab   : > { %848 = vst [vmem:[%s1719_s20 + $0x40] sm:$0xff] %v793_v55 }
 0x3ac   : > { %v795_v56 = vpop.f32.mrf.mxu1 }
 0x3ad   : > { %849 = vst [vmem:[%s1719_s20 + $0x48] sm:$0xff] %v795_v56 }
 0x3ae   : > { %v797_v57 = vpop.f32.mrf.mxu1 }
 0x3af   : > { %850 = vst [vmem:[%s1719_s20 + $0x50] sm:$0xff] %v797_v57 }
 0x3b0   : > { %v799_v58 = vpop.f32.mrf.mxu1 }
 0x3b1   : > { %851 = vst [vmem:[%s1719_s20 + $0x58] sm:$0xff] %v799_v58 }
 0x3b2   : > { %v803_v59 = vpop.f32.mrf.mxu1 }
 0x3b3   : > { %852 = vst [vmem:[%s1719_s20 + $0x60] sm:$0xff] %v803_v59 }
 0x3b4   : > { %v805_v60 = vpop.f32.mrf.mxu1 }
 0x3b5   : > { %853 = vst [vmem:[%s1719_s20 + $0x68] sm:$0xff] %v805_v60 }
 0x3b6   : > { %v807_v61 = vpop.f32.mrf.mxu1 }
 0x3b7   : > { %854 = vst [vmem:[%s1719_s20 + $0x70] sm:$0xff] %v807_v61 }
 0x3b8   : > { %v809_v62 = vpop.f32.mrf.mxu1 }
 0x3b9   : > { %855 = vst [vmem:[%s1719_s20 + $0x78] sm:$0xff] %v809_v62 }
 0x3ba   : > { %v813_v9 = vpop.f32.mrf.mxu1 }
 0x3bb   : > { %856 = vst [vmem:[%s1719_s20 + $0x80] sm:$0xff] %v813_v9 }
 0x3bc   : > { %v815_v17 = vpop.f32.mrf.mxu1 }
 0x3bd   : > { %857 = vst [vmem:[%s1719_s20 + $0x88] sm:$0xff] %v815_v17 }
 0x3be   : > { %v817_v8 = vpop.f32.mrf.mxu1 }
 0x3bf   : > { %858 = vst [vmem:[%s1719_s20 + $0x90] sm:$0xff] %v817_v8 }
 0x3c0   : > { %v819_v63 = vpop.f32.mrf.mxu1 }
 0x3c1   : > { %859 = vst [vmem:[%s1719_s20 + $0x98] sm:$0xff] %v819_v63 }
 0x3c2   : > { %v823_v16 = vpop.f32.mrf.mxu1 }
 0x3c3   : > { %860 = vst [vmem:[%s1719_s20 + $0xa0] sm:$0xff] %v823_v16 }
 0x3c4   : > { %v825_v0 = vpop.f32.mrf.mxu1 }
 0x3c5   : > { %861 = vst [vmem:[%s1719_s20 + $0xa8] sm:$0xff] %v825_v0 }
 0x3c6   : > { %v827_v1 = vpop.f32.mrf.mxu1 }
 0x3c7   : > { %862 = vst [vmem:[%s1719_s20 + $0xb0] sm:$0xff] %v827_v1 }
 0x3c8   : > { %v829_v2 = vpop.f32.mrf.mxu1 }
 0x3c9   : > { %863 = vst [vmem:[%s1719_s20 + $0xb8] sm:$0xff] %v829_v2 }
 0x3ca   : > { %v833_v3 = vpop.f32.mrf.mxu1 }
 0x3cb   : > { %864 = vst [vmem:[%s1719_s20 + $0xc0] sm:$0xff] %v833_v3 }
 0x3cc   : > { %v835_v4 = vpop.f32.mrf.mxu1  ;;  %873 = sbr.rel (!%p1820_p4) target bundleno = 1004 (0x3ec), region = 40 }
 0x3cd   : > { %865 = vst [vmem:[%s1719_s20 + $0xc8] sm:$0xff] %v835_v4 }
 0x3ce   : > { %v837_v24 = vpop.f32.mrf.mxu1 }
 0x3d0   : > { %v838_v27 = vpop.f32.mrf.mxu1 }
 0x3d1   : > { %s1830_s14 = smov (!%p876_p13, %s875_s14), 13 }
 0x3d2   : > { %s1751_s19 = sshll.u32 %s1830_s14, 8 }
 0x3d3   : > { %s881_s26 = ssub.s32 3328, %s1751_s19 }
 0x3d4   : > { %882 = vsyncadd %s867_s23, %s881_s26  ;;  %p1018_p5 = scmp.ne.s32.totalorder %s1751_s19, 0  ;;  %s1032_s21 = smul.u32 3328, %s1384_s13 }
 0x3d5   : > { %s888_s30 = sshll.u32 %s1719_s20, 4  ;;  %s1345_s8 = smov [#allocation7]   ;;  %s1764_s30 = int_to_ptr.vmem [resolvable:$true] %s888_s30 }
 0x3d6   : > { %s1762_s5 = scalar_lea.hbm %s1811_s2, %s1032_s21  ;;  %s1269_s6 = scalar_lea.vmem %s1764_s30, %s1751_s19 }
 0x3d7   : > { %p1270_p1 = scmp.ne.s32.totalorder %s1764_s30, %s1269_s6  ;;  %s1273_s16 = sshll.u32 %s1345_s8, 4  ;;  %s1274_s16 = int_to_ptr.vmem [resolvable:$false] %s1273_s16 }
 0x3d8   : > { %s1275_s13 = scalar_lea.vmem %s1274_s16, 6656  ;;  %p1276_p3 = scmp.lt.s32.totalorder %s1764_s30, %s1274_s16 }
 0x3d9   : > { %p1271_p0 = pnand %p1270_p1, %p1018_p5  ;;  %p1277_p8 = scmp.lt.s32.totalorder %s1275_s13, %s1269_s6 }
 0x3db   : > { %p1272_p7 = pneg %p1271_p0  ;;  %p1278_p9 = por %p1277_p8, %p1276_p3 }
 0x3dd   : > { %p1279_p6 = pnand %p1278_p9, %p1272_p7 }
 0x3df   : > { %1282 = shalt.err (!%p1279_p6)
}
 0x3e0   : > { %s1283_s17 = scalar_lea.hbm %s1762_s5, %s1751_s19  ;;  %s1287_s28 = scalar_lea.hbm %s1811_s2, 6400 }
 0x3e1   : > { %p1284_p11 = scmp.ne.s32.totalorder %s1762_s5, %s1283_s17  ;;  %p1288_p10 = scmp.lt.s32.totalorder %s1762_s5, %s1811_s2 }
 0x3e2   : > { %p1289_p4 = scmp.lt.s32.totalorder %s1287_s28, %s1283_s17 }
 0x3e3   : > { %p1285_p12 = pnand %p1284_p11, %p1018_p5 }
 0x3e4   : > { %p1290_p13 = por %p1289_p4, %p1288_p10 }
 0x3e5   : > { %p1286_p2 = pneg %p1285_p12 }
 0x3e7   : > { %p1291_p1 = pnand %p1290_p13, %p1286_p2 }
 0x3e9   : > { %1294 = shalt.err (!%p1291_p1)
}
 0x3ea   : > { %s1346_s7 = smov 256   ;;  %s1347_s14 = smov 16  }
 0x3eb   : > { %894 = dma.vmem_to_hbm [thread:$0]  (%p1018_p5), %s1764_s30, %s1751_s19, %s1762_s5, %s867_s23, %s1346_s7, %s1346_s7, %s1347_s14  }
 0x3ec PF: > { %s903_s26 = sand.u32 1, %s1325_s9   ;;  %p1821_p0 = scmp.ne.s32.totalorder %s1817_s22, 0 }
 0x3ed   : > { %p1822_p7 = scmp.ge.s32.totalorder %s1337_s12, 2  ;;  %s904_s21 = scalar_lea.sflag [#allocation4], %s903_s26 }
 0x3ef   : > { %p1046_p3 = pnand %p1822_p7, %p1821_p0 }
 0x3f1   : > { %p1047_p8 = pneg %p1046_p3 }
 0x3f3   : > { %1320 = dma.done.wait (%p1047_p8), %s904_s21, 3328  }
 0x3f4   : > { %1322 = vsyncadd (%p1047_p8), %s904_s21, 4294963968  ;;  %p16_p9 = scmp.ge.s32.totalorder %s1388_s15, 4   ;;  %s1823_s9 = smov %s1329_s10 }
 0x3f5   : > { %s1824_s10 = smov %s1333_s11  ;;  %s1825_s11 = smov %s1400_s18 }
 0x3f6   : > { %s1826_s12 = smov %s1388_s15  ;;  %18 = sbr.rel (!%p16_p9) target bundleno = 6 (0x6), region = 77 }
 0x3fb   :  { %909 = vsyncpa [#allocation3], 1 }
 0x3fc   :  { %911 = vsyncpa [#allocation3 + $0x1], 1 }
 0x3fd   :  { %912 = vsyncpa [#allocation6], 1 }
 0x3fe   :  { %913 = vsyncpa [#allocation4], 1 }
 0x3ff   :  { %915 = vsyncpa [#allocation4 + $0x1], 1 }

// kernel: tpu_custom_call.1
= control target key start
LH: loop header
LB: loop body
LE: loop exit
PB: predicated region body
PF: predicated region fallthrough
CT: control target
= control target key end

     0   :  { %7 = vsyncpa [#allocation3], 0  ;;  %s1809_s0 = inlined_call_operand.hbm [shape: f32[200,256], index: 0, kind: input, shape index: {}]   ;;  %s1810_s1 = inlined_call_operand.hbm [shape: bf16[256,256], index: 1, kind: input, shape index: {}]   ;;  %s1811_s2 = inlined_call_operand.hbm [shape: f32[200,256], index: 2, kind: output, shape index: {}]  }
   0x1   :  { %9 = vsyncpa [#allocation3 + $0x1], 0 }
   0x2   :  { %10 = vsyncpa [#allocation6], 0 }
   0x3   :  { %11 = vsyncpa [#allocation4], 0 }
   0x4   :  { %13 = vsyncpa [#allocation4 + $0x1], 0  ;;  %s1363_s9 = smov 0   ;;  %s1365_s10 = smov 0  }
   0x5   :  { %s1367_s11 = smov 0   ;;  %s1369_s12 = smov 0  }
   0x6 LB: > { %s1384_s13 = sadd.s32 4294967295, %s1337_s12   ;;  %s971_s14 = sadd.s32 4294967294, %s1337_s12   ;;  %s1337_s12 = sphi %s1369_s12, %s1826_s12   ;;  %s1333_s11 = sphi %s1367_s11, %s1825_s11   ;;  %s1329_s10 = sphi %s1365_s10, %s1824_s10   ;;  %s1325_s9 = sphi %s1363_s9, %s1823_s9  }
   0x7   : > { %s1388_s15 = sadd.s32 1, %s1337_s12   ;;  %s26_s16 = sadd.s32 1, %s1333_s11 }
   0x8   : > { %s23_s17 = ssub.s32 %s1337_s12, %s1388_s15  ;;  %p33_p0 = scmp.ne.s32.totalorder %s1333_s11, %s1329_s10 }
   0x9   : > { %p24_p1 = scmp.eq.s32.totalorder %s23_s17, 0  ;;  %p34_p2 = scmp.eq.s32.totalorder %s1337_s12, 0 }
   0xa   : > { %p39_p3 = scmp.ne.s32.totalorder %s1329_s10, %s1325_s9  ;;  %p40_p4 = scmp.eq.s32.totalorder %s1384_s13, 0 }
   0xb   : > { %s1400_s18 = scalar_select %p24_p1, %s1333_s11, %s26_s16  }
   0xc   : > { %p1402_p5 = por %p34_p2, %p33_p0  ;;  %p1408_p6 = por %p40_p4, %p39_p3 }
   0xd   : > { %p84_p7 = scmp.eq.s32.totalorder %s1384_s13, 1  ;;  %p90_p8 = scmp.eq.s32.totalorder %s971_s14, 1 }
   0xe   : > { %s1815_s20 = scalar_select %p1408_p6, 1, 0 }
   0xf   : > { %p972_p9 = scmp.ge.s32.totalorder %s1337_s12, 1  ;;  %p97_p10 = scmp.lt.s32.totalorder %s1337_s12, 3 }
  0x10   : > { %p1415_p11 = por %p84_p7, %p33_p0  ;;  %p1419_p12 = por %p90_p8, %p39_p3 }
  0x11   : > { %p1423_p13 = pnand %p972_p9, %p97_p10  ;;  %s1339_s24 = smov [#allocation5]  }
  0x12   : > { %s1816_s21 = scalar_select %p1415_p11, 1, 0 }
  0x13   : > { %s1817_s22 = scalar_select %p1419_p12, 1, 0 }
  0x14   : > { %p1041_p1 = pneg %p1423_p13  ;;  %s109_s25 = sshll.u32 %s1339_s24, 4  ;;  %s110_s25 = int_to_ptr.vmem [resolvable:$true] %s109_s25 }
  0x15   : > { %s1228_s26 = scalar_lea.vmem %s110_s25, 4096  ;;  %p1236_p8 = scmp.lt.s32.totalorder %s110_s25, %s110_s25 }
  0x16   : > { %p1042_p2 = pnand %p1041_p1, %p40_p4  ;;  %p1229_p7 = scmp.ne.s32.totalorder %s110_s25, %s1228_s26 }
  0x17   : > { %p1237_p6 = scmp.lt.s32.totalorder %s1228_s26, %s1228_s26 }
  0x18   : > { %p1219_p0 = pneg %p1042_p2 }
  0x19   : > { %p1238_p12 = por %p1237_p6, %p1236_p8 }
  0x1a   : > { %p1231_p11 = pnand %p1229_p7, %p1219_p0 }
  0x1c   : > { %p1232_p3 = pneg %p1231_p11 }
  0x1e   : > { %p1239_p9 = pnand %p1238_p12, %p1232_p3 }
  0x20   : > { %1242 = shalt.err (!%p1239_p9)
}
  0x21   : > { %s1340_s27 = smov 128   ;;  %s1341_s28 = smov 8  }
  0x22   : > { %1044 = dma.hbm_to_vmem [thread:$0]  (!%p1042_p2), %s1810_s1, 4096, %s110_s25, [#allocation6], %s1340_s27, %s1340_s27, %s1341_s28  }
  0x23   : > { %p1813_p10 = scmp.ge.s32.totalorder %s1337_s12, 2 }
  0x25   : > { %119 = sbr.rel (%p1813_p10) target bundleno = 76 (0x4c), region = 20 }
  0x2a   : > { %122 = sbr.rel (!%p1402_p5) target bundleno = 76 (0x4c), region = 24  ;;  %s123_s3 = sand.u32 (%p1402_p5), 1, %s1333_s11  }
  0x2b   : > { %s128_s4 = smul.u32 (%p1402_p5), 13, %s1337_s12  ;;  %s1444_s14 = scalar_lea.sflag (%p1402_p5), [#allocation3], %s123_s3 }
  0x2c   : > { %s1033_s5 = smul.u32 (%p1402_p5), 208, %s123_s3 }
  0x2d   : > { %s129_s6 = ssub.s32 (%p1402_p5), 25, %s128_s4 }
  0x2e   : > { %p130_p6 = scmp.lt.s32.totalorder (%p1402_p5), %s129_s6, 13  ;;  %s127_s16 = scalar_lea.vmem (%p1402_p5), [#allocation2], %s1033_s5 }
  0x30   : > { %s1828_s6 = smov (!%p130_p6, %s129_s6), 13 }
  0x31   : > { %s1441_s7 = sshll.u32 %s1828_s6, 8 }
  0x32   : > { %s135_s8 = ssub.s32 3328, %s1441_s7 }
  0x33   : > { %136 = vsyncadd %s1444_s14, %s135_s8  ;;  %p977_p5 = scmp.ne.s32.totalorder %s1441_s7, 0  ;;  %s1031_s17 = smul.u32 3328, %s1337_s12 }
  0x34   : > { %s142_s19 = sshll.u32 %s127_s16, 4  ;;  %s1247_s30 = scalar_lea.hbm %s1809_s0, 6400  ;;  %s1454_s19 = int_to_ptr.vmem [resolvable:$true] %s142_s19 }
  0x35   : > { %s1452_s26 = scalar_lea.hbm %s1809_s0, %s1031_s17 }
  0x36   : > { %s1243_s27 = scalar_lea.hbm %s1452_s26, %s1441_s7  ;;  %p1248_p2 = scmp.lt.s32.totalorder %s1452_s26, %s1809_s0 }
  0x37   : > { %p1244_p11 = scmp.ne.s32.totalorder %s1452_s26, %s1243_s27  ;;  %p1249_p0 = scmp.lt.s32.totalorder %s1247_s30, %s1243_s27 }
  0x39   : > { %p1245_p12 = pnand %p1244_p11, %p977_p5  ;;  %p1250_p7 = por %p1249_p0, %p1248_p2 }
  0x3b   : > { %p1246_p1 = pneg %p1245_p12 }
  0x3d   : > { %p1251_p3 = pnand %p1250_p7, %p1246_p1 }
  0x3f   : > { %1254 = shalt.err (!%p1251_p3)
}
  0x40   : > { %s1255_s5 = scalar_lea.vmem %s1454_s19, %s1441_s7  ;;  %s1342_s6 = smov [#allocation2]  }
  0x41   : > { %p1256_p8 = scmp.ne.s32.totalorder %s1454_s19, %s1255_s5  ;;  %s1259_s8 = sshll.u32 %s1342_s6, 4  ;;  %s1260_s8 = int_to_ptr.vmem [resolvable:$false] %s1259_s8 }
  0x42   : > { %s1261_s16 = scalar_lea.vmem %s1260_s8, 6656  ;;  %p1262_p11 = scmp.lt.s32.totalorder %s1454_s19, %s1260_s8 }
  0x43   : > { %p1257_p9 = pnand %p1256_p8, %p977_p5  ;;  %p1263_p12 = scmp.lt.s32.totalorder %s1261_s16, %s1255_s5 }
  0x45   : > { %p1258_p6 = pneg %p1257_p9  ;;  %p1264_p10 = por %p1263_p12, %p1262_p11 }
  0x47   : > { %p1265_p2 = pnand %p1264_p10, %p1258_p6 }
  0x49   : > { %1268 = shalt.err (!%p1265_p2)
}
  0x4a   : > { %s1343_s17 = smov 256   ;;  %s1344_s24 = smov 16  }
  0x4b   : > { %148 = dma.hbm_to_vmem [thread:$0]  (%p977_p5), %s1452_s26, %s1441_s7, %s1454_s19, %s1444_s14, %s1343_s17, %s1343_s17, %s1344_s24  }
  0x4c PF: > { %154 = sbr.rel (%p1423_p13) target bundleno = 1004 (0x3ec), region = 28  ;;  %s1483_s25 = sand.u32 (!%p1423_p13), 1, %s1329_s10  }
  0x4d   : > { %s1034_s27 = smul.u32 (!%p1423_p13), 208, %s1483_s25  ;;  %s157_s28 = scalar_lea.sflag (!%p1423_p13), [#allocation3], %s1483_s25 }
  0x4e   : > { %p1819_p10 = scmp.ne.s32.totalorder (!%p1423_p13), %s1815_s20, 0 }
  0x4f   : > { %s1489_s29 = scalar_lea.vmem (!%p1423_p13), [#allocation2], %s1034_s27 }
  0x51   : > { %1312 = dma.done.wait (%p1819_p10), %s157_s28, 3328  }
  0x52   : > { %1314 = vsyncadd (%p1819_p10), %s157_s28, 4294963968 }
  0x53   : > { %1316 = dma.done.wait (%p40_p4), [#allocation6], 4096  }
  0x54   : > { %1318 = vsyncadd (%p40_p4), [#allocation6], 4294963200  ;;  %v1091_v0 = vld [vmem:[#allocation5 + $0x74] ss:$8 sps:$4 sm:$0xff]   ;;  %v1093_v1 = vld [vmem:[#allocation5 + $0x70] ss:$8 sps:$4 sm:$0xff]  }
  0x55   : > { %429 = vmatprep.subr.bf16.mxu0 %v1091_v0  ;;  %v1094_v2 = vld [vmem:[#allocation5 + $0x64] ss:$8 sps:$4 sm:$0xff]   ;;  %739 = vmatprep.subr.bf16.mxu1 %v1091_v0  ;;  %v1096_v3 = vld [vmem:[#allocation5 + $0x60] ss:$8 sps:$4 sm:$0xff]   ;;  %v1097_v4 = vld [vmem:[#allocation5 + $0x54] ss:$8 sps:$4 sm:$0xff]  }
  0x56   : > { %430 = vmatpush1.bf16.xpose.msra.mxu0 %v1093_v1  ;;  %740 = vmatpush1.bf16.msra.mxu1 %v1093_v1  ;;  %v1099_v5 = vld [vmem:[#allocation5 + $0x50] ss:$8 sps:$4 sm:$0xff]   ;;  %v1100_v6 = vld [vmem:[#allocation5 + $0x44] ss:$8 sps:$4 sm:$0xff]   ;;  %v1102_v7 = vld [vmem:[#allocation5 + $0x40] ss:$8 sps:$4 sm:$0xff]  }
  0x57   : > { %431 = vmatprep.subr.bf16.mxu0 %v1094_v2  ;;  %741 = vmatprep.subr.bf16.mxu1 %v1094_v2  ;;  %v1103_v8 = vld [vmem:[#allocation5 + $0x34] ss:$8 sps:$4 sm:$0xff]   ;;  %v1105_v9 = vld [vmem:[#allocation5 + $0x30] ss:$8 sps:$4 sm:$0xff]   ;;  %v1106_v10 = vld [vmem:[#allocation5 + $0x24] ss:$8 sps:$4 sm:$0xff]  }
  0x58   : > { %v1108_v11 = vld [vmem:[#allocation5 + $0x20] ss:$8 sps:$4 sm:$0xff]   ;;  %v1109_v14 = vld [vmem:[#allocation5 + $0x14] ss:$8 sps:$4 sm:$0xff]   ;;  %v1111_v16 = vld [vmem:[#allocation5 + $0x10] ss:$8 sps:$4 sm:$0xff]  }
  0x59   : > { %v230_v12 = vld [vmem:[%s1489_s29 + $0x8] sm:$0xff]  ;;  %v232_v13 = vld [vmem:[%s1489_s29 + $0x18] sm:$0xff]  ;;  %v229_v35 = vld [vmem:[%s1489_s29] sm:$0xff]  ;;  %s1719_s20 = scalar_lea.vmem [#allocation7], %s1034_s27  ;;  %s867_s23 = scalar_lea.sflag [#allocation4], %s1483_s25 }
  0x5a   : > { %742 = vmatpush1.bf16.msra.mxu1 %v1096_v3  ;;  %v256_v15 = vpack.c.bf16 %v232_v13, %v230_v12  ;;  %v1112_v17 = vld [vmem:[#allocation5 + $0x4] ss:$8 sps:$4 sm:$0xff]   ;;  %v1114_v18 = vld [vmem:[#allocation5] ss:$8 sps:$4 sm:$0xff]   ;;  %v1115_v19 = vld [vmem:[#allocation5 + $0xf4] ss:$8 sps:$4 sm:$0xff]  }
  0x5b   : > { %743 = vmatprep.subr.bf16.mxu1 %v1097_v4  ;;  %v1117_v20 = vld [vmem:[#allocation5 + $0xf0] ss:$8 sps:$4 sm:$0xff]   ;;  %v1118_v21 = vld [vmem:[#allocation5 + $0xe4] ss:$8 sps:$4 sm:$0xff]   ;;  %v1120_v22 = vld [vmem:[#allocation5 + $0xe0] ss:$8 sps:$4 sm:$0xff]  }
  0x5c   : > { %461 = vmatprep.mubr.bf16.mxu0 %v256_v15  ;;  %v1121_v23 = vld [vmem:[#allocation5 + $0xd4] ss:$8 sps:$4 sm:$0xff]   ;;  %v1123_v24 = vld [vmem:[#allocation5 + $0xd0] ss:$8 sps:$4 sm:$0xff]   ;;  %v1124_v25 = vld [vmem:[#allocation5 + $0xc4] ss:$8 sps:$4 sm:$0xff]  }
  0x5d   : > { %v1126_v26 = vld [vmem:[#allocation5 + $0xc0] ss:$8 sps:$4 sm:$0xff]   ;;  %v1127_v27 = vld [vmem:[#allocation5 + $0xb4] ss:$8 sps:$4 sm:$0xff]   ;;  %v1129_v28 = vld [vmem:[#allocation5 + $0xb0] ss:$8 sps:$4 sm:$0xff]  }
  0x5e   : > { %432 = vmatpush1.bf16.xpose.msra.mxu0 %v1096_v3  ;;  %744 = vmatpush1.bf16.msra.mxu1 %v1099_v5  ;;  %v1130_v29 = vld [vmem:[#allocation5 + $0xa4] ss:$8 sps:$4 sm:$0xff]   ;;  %v1132_v30 = vld [vmem:[#allocation5 + $0xa0] ss:$8 sps:$4 sm:$0xff]   ;;  %v1133_v31 = vld [vmem:[#allocation5 + $0x94] ss:$8 sps:$4 sm:$0xff]  }
  0x5f   : > { %433 = vmatprep.subr.bf16.mxu0 %v1097_v4  ;;  %745 = vmatprep.subr.bf16.mxu1 %v1100_v6  ;;  %v1135_v32 = vld [vmem:[#allocation5 + $0x90] ss:$8 sps:$4 sm:$0xff]   ;;  %v1136_v33 = vld [vmem:[#allocation5 + $0x84] ss:$8 sps:$4 sm:$0xff]   ;;  %v1138_v34 = vld [vmem:[#allocation5 + $0x80] ss:$8 sps:$4 sm:$0xff]  }
  0x60   : > { %v231_v36 = vld [vmem:[%s1489_s29 + $0x10] sm:$0xff]  ;;  %v234_v37 = vld [vmem:[%s1489_s29 + $0x28] sm:$0xff]  ;;  %v236_v38 = vld [vmem:[%s1489_s29 + $0x38] sm:$0xff]  ;;  %p1820_p4 = scmp.ne.s32.totalorder %s1816_s21, 0 }
  0x61   : > { %v255_v39 = vpack.c.bf16 %v231_v36, %v229_v35  ;;  %v258_v40 = vpack.c.bf16 %v236_v38, %v234_v37  ;;  %v233_v41 = vld [vmem:[%s1489_s29 + $0x20] sm:$0xff]  ;;  %v235_v42 = vld [vmem:[%s1489_s29 + $0x30] sm:$0xff]  ;;  %v238_v43 = vld [vmem:[%s1489_s29 + $0x48] sm:$0xff]  ;;  %s874_s7 = smul.u32 (%p1820_p4), 13, %s1384_s13 }
  0x62   : > { %746 = vmatpush1.bf16.msra.mxu1 %v1102_v7  ;;  %v240_v44 = vld [vmem:[%s1489_s29 + $0x58] sm:$0xff]  ;;  %v257_v45 = vpack.c.bf16 %v235_v42, %v233_v41  ;;  %v237_v47 = vld [vmem:[%s1489_s29 + $0x40] sm:$0xff]  ;;  %v239_v48 = vld [vmem:[%s1489_s29 + $0x50] sm:$0xff] }
  0x63   : > { %747 = vmatprep.subr.bf16.mxu1 %v1103_v8  ;;  %v260_v46 = vpack.c.bf16 %v240_v44, %v238_v43  ;;  %v242_v49 = vld [vmem:[%s1489_s29 + $0x68] sm:$0xff]  ;;  %v244_v50 = vld [vmem:[%s1489_s29 + $0x78] sm:$0xff]  ;;  %v259_v51 = vpack.c.bf16 %v239_v48, %v237_v47  ;;  %v241_v53 = vld [vmem:[%s1489_s29 + $0x60] sm:$0xff]  ;;  %s875_s14 = ssub.s32 (%p1820_p4), 25, %s874_s7 }
  0x64   : > { %v262_v52 = vpack.c.bf16 %v244_v50, %v242_v49  ;;  %v243_v54 = vld [vmem:[%s1489_s29 + $0x70] sm:$0xff]  ;;  %v246_v55 = vld [vmem:[%s1489_s29 + $0x88] sm:$0xff]  ;;  %v248_v56 = vld [vmem:[%s1489_s29 + $0x98] sm:$0xff]  ;;  %p876_p13 = scmp.lt.s32.totalorder (%p1820_p4), %s875_s14, 13 }
  0x65   : > { %v261_v57 = vpack.c.bf16 %v243_v54, %v241_v53  ;;  %v264_v58 = vpack.c.bf16 %v248_v56, %v246_v55  ;;  %v245_v59 = vld [vmem:[%s1489_s29 + $0x80] sm:$0xff]  ;;  %v247_v60 = vld [vmem:[%s1489_s29 + $0x90] sm:$0xff]  ;;  %v250_v61 = vld [vmem:[%s1489_s29 + $0xa8] sm:$0xff] }
  0x66   : > { %434 = vmatpush1.bf16.xpose.msra.mxu0 %v1099_v5  ;;  %748 = vmatpush1.bf16.msra.mxu1 %v1105_v9  ;;  %v252_v62 = vld [vmem:[%s1489_s29 + $0xb8] sm:$0xff]  ;;  %v263_v63 = vpack.c.bf16 %v247_v60, %v245_v59  ;;  %v249_v1 = vld [vmem:[%s1489_s29 + $0xa0] sm:$0xff]  ;;  %v251_v2 = vld [vmem:[%s1489_s29 + $0xb0] sm:$0xff] }
  0x67   : > { %435 = vmatprep.subr.bf16.mxu0 %v1100_v6  ;;  %749 = vmatprep.subr.bf16.mxu1 %v1106_v10  ;;  %v266_v0 = vpack.c.bf16 %v252_v62, %v250_v61  ;;  %v254_v3 = vld [vmem:[%s1489_s29 + $0xc8] sm:$0xff]  ;;  %v265_v4 = vpack.c.bf16 %v251_v2, %v249_v1  ;;  %v253_v6 = vld [vmem:[%s1489_s29 + $0xc0] sm:$0xff] }
  0x68   : > { %v268_v5 = vpack.c.bf16 %v254_v3, %v254_v3 }
  0x6a   : > { %750 = vmatpush1.bf16.msra.mxu1 %v1108_v11 }
  0x6b   : > { %751 = vmatprep.subr.bf16.mxu1 %v1109_v14 }
  0x6e   : > { %436 = vmatpush1.bf16.xpose.msra.mxu0 %v1102_v7  ;;  %752 = vmatpush1.bf16.msra.mxu1 %v1111_v16  ;;  %v267_v7 = vpack.c.bf16 %v253_v6, %v253_v6 }
  0x6f   : > { %437 = vmatprep.subr.bf16.mxu0 %v1103_v8  ;;  %753 = vmatprep.subr.bf16.mxu1 %v1112_v17 }
  0x72   : > { %754 = vmatpush1.bf16.msra.mxu1 %v1114_v18 }
  0x73   : > { %755 = vmatprep.subr.bf16.mxu1 %v1115_v19 }
  0x76   : > { %438 = vmatpush1.bf16.xpose.msra.mxu0 %v1105_v9  ;;  %756 = vmatpush2.bf16.msra.mxu1 %v1117_v20 }
  0x77   : > { %439 = vmatprep.subr.bf16.mxu0 %v1106_v10  ;;  %757 = vmatprep.subr.bf16.mxu1 %v1118_v21 }
  0x7a   : > { %758 = vmatpush2.bf16.msra.mxu1 %v1120_v22 }
  0x7b   : > { %759 = vmatprep.subr.bf16.mxu1 %v1121_v23 }
  0x7e   : > { %440 = vmatpush1.bf16.xpose.msra.mxu0 %v1108_v11  ;;  %760 = vmatpush2.bf16.msra.mxu1 %v1123_v24 }
  0x7f   : > { %441 = vmatprep.subr.bf16.mxu0 %v1109_v14  ;;  %761 = vmatprep.subr.bf16.mxu1 %v1124_v25 }
  0x82   : > { %762 = vmatpush2.bf16.msra.mxu1 %v1126_v26 }
  0x83   : > { %763 = vmatprep.subr.bf16.mxu1 %v1127_v27 }
  0x86   : > { %442 = vmatpush1.bf16.xpose.msra.mxu0 %v1111_v16  ;;  %764 = vmatpush2.bf16.msra.mxu1 %v1129_v28 }
  0x87   : > { %443 = vmatprep.subr.bf16.mxu0 %v1112_v17  ;;  %765 = vmatprep.subr.bf16.mxu1 %v1130_v29 }
  0x8a   : > { %766 = vmatpush2.bf16.msra.mxu1 %v1132_v30 }
  0x8b   : > { %767 = vmatprep.subr.bf16.mxu1 %v1133_v31 }
  0x8e   : > { %444 = vmatpush1.bf16.xpose.msra.mxu0 %v1114_v18  ;;  %768 = vmatpush2.bf16.msra.mxu1 %v1135_v32 }
  0x8f   : > { %445 = vmatprep.subr.bf16.mxu0 %v1115_v19  ;;  %769 = vmatprep.subr.bf16.mxu1 %v1136_v33 }
  0x92   : > { %770 = vmatpush2.bf16.msra.mxu1 %v1138_v34 }
  0x96   : > { %446 = vmatpush2.bf16.xpose.msra.mxu0 %v1117_v20 }
  0x97   : > { %447 = vmatprep.subr.bf16.mxu0 %v1118_v21 }
  0x9e   : > { %448 = vmatpush2.bf16.xpose.msra.mxu0 %v1120_v22 }
  0x9f   : > { %449 = vmatprep.subr.bf16.mxu0 %v1121_v23 }
  0xa6   : > { %450 = vmatpush2.bf16.xpose.msra.mxu0 %v1123_v24 }
  0xa7   : > { %451 = vmatprep.subr.bf16.mxu0 %v1124_v25 }
  0xae   : > { %452 = vmatpush2.bf16.xpose.msra.mxu0 %v1126_v26 }
  0xaf   : > { %453 = vmatprep.subr.bf16.mxu0 %v1127_v27 }
  0xb6   : > { %454 = vmatpush2.bf16.xpose.msra.mxu0 %v1129_v28 }
  0xb7   : > { %455 = vmatprep.subr.bf16.mxu0 %v1130_v29 }
  0xbe   : > { %456 = vmatpush2.bf16.xpose.msra.mxu0 %v1132_v30 }
  0xbf   : > { %457 = vmatprep.subr.bf16.mxu0 %v1133_v31 }
  0xc6   : > { %458 = vmatpush2.bf16.xpose.msra.mxu0 %v1135_v32 }
  0xc7   : > { %459 = vmatprep.subr.bf16.mxu0 %v1136_v33 }
  0xce   : > { %460 = vmatpush2.bf16.xpose.msra.mxu0 %v1138_v34 }
  0xd5   : > { %462 = vmatmul.mubr.bf16.vlgmr.msra.gmra.mxu0 %v255_v39 }
  0xd6   : > { %471 = vmatprep.mubr.bf16.mxu0 %v258_v40 }
  0xdd   : > { %472 = vmatmul.mubr.bf16.gmra.mxu0 %v257_v45 }
  0xde   : > { %481 = vmatprep.mubr.bf16.mxu0 %v260_v46 }
  0xe5   : > { %482 = vmatmul.mubr.bf16.gmra.mxu0 %v259_v51 }
  0xe6   : > { %491 = vmatprep.mubr.bf16.mxu0 %v262_v52 }
  0xed   : > { %492 = vmatmul.mubr.bf16.gmra.mxu0 %v261_v57 }
  0xee   : > { %501 = vmatprep.mubr.bf16.mxu0 %v264_v58 }
  0xf5   : > { %502 = vmatmul.mubr.bf16.gmra.mxu0 %v263_v63 }
  0xf6   : > { %511 = vmatprep.mubr.bf16.mxu0 %v266_v0 }
  0xfd   : > { %512 = vmatmul.mubr.bf16.gmra.mxu0 %v265_v4 }
  0xfe   : > { %521 = vmatprep.mubr.bf16.mxu0 %v268_v5 }
 0x105   : > { %522 = vmatmul.mubr.bf16.gmra.mxu0 %v267_v7 }
 0x195   : > { %v463_v8 = vpop.f32.mrf.mxu0 }
 0x197   : > { %v465_v9 = vpop.f32.mrf.mxu0 }
 0x198   : > { %v530_v10 = vmax.f32 %v463_v8, %v465_v9 }
 0x199   : > { %v467_v11 = vpop.f32.mrf.mxu0 }
 0x19a   : > { %531 = vmax.xlane.f32.xlu0 %v530_v10 }
 0x19b   : > { %v469_v12 = vpop.f32.mrf.mxu0 }
 0x19c   : > { %v533_v13 = vmax.f32 %v467_v11, %v469_v12 }
 0x19d   : > { %v1525_v14 = vpop.f32.mrf.mxu0 }
 0x19e   : > { %534 = vmax.xlane.f32.xlu0 %v533_v13 }
 0x19f   : > { %v1527_v15 = vpop.f32.mrf.mxu0 }
 0x1a0   : > { %v536_v16 = vmax.f32 %v1525_v14, %v1527_v15 }
 0x1a1   : > { %v1531_v17 = vpop.f32.mrf.mxu0 }
 0x1a2   : > { %537 = vmax.xlane.f32.xlu1 %v536_v16 }
 0x1a3   : > { %v1533_v18 = vpop.f32.mrf.mxu0 }
 0x1a4   : > { %v539_v19 = vmax.f32 %v1531_v17, %v1533_v18 }
 0x1a5   : > { %v1537_v20 = vpop.f32.mrf.mxu0 }
 0x1a6   : > { %540 = vmax.xlane.f32.xlu1 %v539_v19 }
 0x1a7   : > { %v1539_v21 = vpop.f32.mrf.mxu0 }
 0x1a8   : > { %v542_v22 = vmax.f32 %v1537_v20, %v1539_v21 }
 0x1a9   : > { %v1543_v23 = vpop.f32.mrf.mxu0 }
 0x1aa   : > { %543 = vmax.xlane.f32.xlu0 %v542_v22 }
 0x1ab   : > { %v1545_v24 = vpop.f32.mrf.mxu0 }
 0x1ac   : > { %v545_v25 = vmax.f32 %v1543_v23, %v1545_v24 }
 0x1ad   : > { %v1549_v26 = vpop.f32.mrf.mxu0 }
 0x1ae   : > { %546 = vmax.xlane.f32.xlu1 %v545_v25 }
 0x1af   : > { %v1551_v27 = vpop.f32.mrf.mxu0 }
 0x1b0   : > { %v548_v28 = vmax.f32 %v1549_v26, %v1551_v27 }
 0x1b1   : > { %v1555_v29 = vpop.f32.mrf.mxu0 }
 0x1b2   : > { %549 = vmax.xlane.f32.xlu0 %v548_v28 }
 0x1b3   : > { %v1557_v30 = vpop.f32.mrf.mxu0 }
 0x1b4   : > { %v551_v31 = vmax.f32 %v1555_v29, %v1557_v30 }
 0x1b5   : > { %v1561_v32 = vpop.f32.mrf.mxu0 }
 0x1b6   : > { %552 = vmax.xlane.f32.xlu1 %v551_v31 }
 0x1b7   : > { %v1563_v33 = vpop.f32.mrf.mxu0 }
 0x1b8   : > { %v554_v34 = vmax.f32 %v1561_v32, %v1563_v33 }
 0x1b9   : > { %v1567_v35 = vpop.f32.mrf.mxu0 }
 0x1ba   : > { %555 = vmax.xlane.f32.xlu0 %v554_v34 }
 0x1bb   : > { %v1569_v36 = vpop.f32.mrf.mxu0 }
 0x1bc   : > { %v557_v37 = vmax.f32 %v1567_v35, %v1569_v36 }
 0x1bd   : > { %v1573_v38 = vpop.f32.mrf.mxu0 }
 0x1be   : > { %558 = vmax.xlane.f32.xlu1 %v557_v37 }
 0x1bf   : > { %v1575_v39 = vpop.f32.mrf.mxu0 }
 0x1c0   : > { %v560_v40 = vmax.f32 %v1573_v38, %v1575_v39 }
 0x1c1   : > { %v1579_v41 = vpop.f32.mrf.mxu0 }
 0x1c2   : > { %561 = vmax.xlane.f32.xlu0 %v560_v40 }
 0x1c3   : > { %v1581_v42 = vpop.f32.mrf.mxu0 }
 0x1c4   : > { %v563_v43 = vmax.f32 %v1579_v41, %v1581_v42 }
 0x1c5   : > { %v1585_v44 = vpop.f32.mrf.mxu0 }
 0x1c6   : > { %564 = vmax.xlane.f32.xlu1 %v563_v43 }
 0x1c7   : > { %v1587_v45 = vpop.f32.mrf.mxu0 }
 0x1c8   : > { %v566_v46 = vmax.f32 %v1585_v44, %v1587_v45 }
 0x1c9   : > { %v527_v47 = vpop.f32.mrf.mxu0 }
 0x1ca   : > { %567 = vmax.xlane.f32.xlu0 %v566_v46 }
 0x1cb   : > { %v528_v48 = vpop.f32.mrf.mxu0 }
 0x223   : > { %v532_v49 = vpop.xlane.xlu0 %531 }
 0x224   : > { %v569_v50 = vsub.f32 %v463_v8, %v532_v49  ;;  %v570_v51 = vsub.f32 %v465_v9, %v532_v49 }
 0x226   : > { %v595_v52 = vmul.f32 1.442695, %v569_v50  ;;  %v597_v53 = vmul.f32 1.442695, %v570_v51 }
 0x227   : > { %v535_v54 = vpop.xlane.xlu0 %534 }
 0x228   : > { %1139 = vpow2.f32 %v595_v52  ;;  %v571_v55 = vsub.f32 %v467_v11, %v535_v54  ;;  %v572_v56 = vsub.f32 %v469_v12, %v535_v54 }
 0x229   : > { %1141 = vpow2.f32 %v597_v53 }
 0x22a   : > { %v599_v57 = vmul.f32 1.442695, %v571_v55  ;;  %v601_v58 = vmul.f32 1.442695, %v572_v56 }
 0x22b   : > { %v538_v59 = vpop.xlane.xlu1 %537 }
 0x22c   : > { %1143 = vpow2.f32 %v599_v57  ;;  %v573_v60 = vsub.f32 %v1525_v14, %v538_v59  ;;  %v574_v61 = vsub.f32 %v1527_v15, %v538_v59 }
 0x22d   : > { %1145 = vpow2.f32 %v601_v58 }
 0x22e   : > { %v603_v62 = vmul.f32 1.442695, %v573_v60  ;;  %v605_v63 = vmul.f32 1.442695, %v574_v61 }
 0x22f   : > { %v541_v0 = vpop.xlane.xlu1 %540 }
 0x230   : > { %1147 = vpow2.f32 %v603_v62  ;;  %v575_v1 = vsub.f32 %v1531_v17, %v541_v0  ;;  %v576_v2 = vsub.f32 %v1533_v18, %v541_v0 }
 0x231   : > { %1149 = vpow2.f32 %v605_v63 }
 0x232   : > { %v607_v3 = vmul.f32 1.442695, %v575_v1  ;;  %v609_v4 = vmul.f32 1.442695, %v576_v2 }
 0x233   : > { %v544_v5 = vpop.xlane.xlu0 %543 }
 0x234   : > { %1151 = vpow2.f32 %v607_v3  ;;  %v577_v6 = vsub.f32 %v1537_v20, %v544_v5  ;;  %v578_v7 = vsub.f32 %v1539_v21, %v544_v5 }
 0x235   : > { %v1597_v8 = vpop.eup %1139  ;;  %1153 = vpow2.f32 %v609_v4 }
 0x236   : > { %v1599_v9 = vpop.eup %1141  ;;  %v611_v10 = vmul.f32 1.442695, %v577_v6  ;;  %v613_v11 = vmul.f32 1.442695, %v578_v7 }
 0x237   : > { %v547_v12 = vpop.xlane.xlu1 %546  ;;  %v647_v13 = vadd.f32 %v1599_v9, %v1597_v8 }
 0x238   : > { %1155 = vpow2.f32 %v611_v10  ;;  %v579_v14 = vsub.f32 %v1543_v23, %v547_v12  ;;  %v580_v15 = vsub.f32 %v1545_v24, %v547_v12 }
 0x239   : > { %v1605_v16 = vpop.eup %1143  ;;  %1157 = vpow2.f32 %v613_v11  ;;  %648 = vadd.xlane.f32.xlu1 %v647_v13 }
 0x23a   : > { %v1607_v17 = vpop.eup %1145  ;;  %v615_v18 = vmul.f32 1.442695, %v579_v14  ;;  %v617_v19 = vmul.f32 1.442695, %v580_v15 }
 0x23b   : > { %v550_v20 = vpop.xlane.xlu0 %549  ;;  %v650_v21 = vadd.f32 %v1607_v17, %v1605_v16 }
 0x23c   : > { %1159 = vpow2.f32 %v615_v18  ;;  %v581_v22 = vsub.f32 %v1549_v26, %v550_v20  ;;  %v582_v25 = vsub.f32 %v1551_v27, %v550_v20 }
 0x23d   : > { %v1613_v23 = vpop.eup %1147  ;;  %1161 = vpow2.f32 %v617_v19  ;;  %651 = vadd.xlane.f32.xlu0 %v650_v21 }
 0x23e   : > { %v1615_v24 = vpop.eup %1149  ;;  %v619_v28 = vmul.f32 1.442695, %v581_v22  ;;  %v621_v31 = vmul.f32 1.442695, %v582_v25 }
 0x23f   : > { %v553_v34 = vpop.xlane.xlu1 %552  ;;  %v653_v37 = vadd.f32 %v1615_v24, %v1613_v23 }
 0x240   : > { %1163 = vpow2.f32 %v619_v28  ;;  %v583_v40 = vsub.f32 %v1555_v29, %v553_v34  ;;  %v584_v43 = vsub.f32 %v1557_v30, %v553_v34 }
 0x241   : > { %v1621_v26 = vpop.eup %1151  ;;  %1165 = vpow2.f32 %v621_v31  ;;  %654 = vadd.xlane.f32.xlu1 %v653_v37 }
 0x242   : > { %v1623_v27 = vpop.eup %1153  ;;  %v623_v46 = vmul.f32 1.442695, %v583_v40  ;;  %v625_v47 = vmul.f32 1.442695, %v584_v43 }
 0x243   : > { %v556_v48 = vpop.xlane.xlu0 %555  ;;  %v656_v49 = vadd.f32 %v1623_v27, %v1621_v26 }
 0x244   : > { %1167 = vpow2.f32 %v623_v46  ;;  %v585_v50 = vsub.f32 %v1561_v32, %v556_v48  ;;  %v586_v51 = vsub.f32 %v1563_v33, %v556_v48 }
 0x245   : > { %v1629_v29 = vpop.eup %1155  ;;  %1169 = vpow2.f32 %v625_v47  ;;  %657 = vadd.xlane.f32.xlu0 %v656_v49 }
 0x246   : > { %v1631_v30 = vpop.eup %1157  ;;  %v627_v52 = vmul.f32 1.442695, %v585_v50  ;;  %v629_v53 = vmul.f32 1.442695, %v586_v51 }
 0x247   : > { %v559_v54 = vpop.xlane.xlu1 %558  ;;  %v659_v55 = vadd.f32 %v1631_v30, %v1629_v29 }
 0x248   : > { %1171 = vpow2.f32 %v627_v52  ;;  %v587_v56 = vsub.f32 %v1567_v35, %v559_v54  ;;  %v588_v57 = vsub.f32 %v1569_v36, %v559_v54 }
 0x249   : > { %v1637_v32 = vpop.eup %1159  ;;  %1173 = vpow2.f32 %v629_v53  ;;  %660 = vadd.xlane.f32.xlu1 %v659_v55 }
 0x24a   : > { %v1639_v33 = vpop.eup %1161  ;;  %v631_v58 = vmul.f32 1.442695, %v587_v56  ;;  %v633_v59 = vmul.f32 1.442695, %v588_v57 }
 0x24b   : > { %v562_v60 = vpop.xlane.xlu0 %561  ;;  %v662_v61 = vadd.f32 %v1639_v33, %v1637_v32 }
 0x24c   : > { %1175 = vpow2.f32 %v631_v58  ;;  %v589_v62 = vsub.f32 %v1573_v38, %v562_v60  ;;  %v590_v63 = vsub.f32 %v1575_v39, %v562_v60 }
 0x24d   : > { %v1645_v35 = vpop.eup %1163  ;;  %1177 = vpow2.f32 %v633_v59  ;;  %663 = vadd.xlane.f32.xlu0 %v662_v61 }
 0x24e   : > { %v1647_v36 = vpop.eup %1165  ;;  %v635_v0 = vmul.f32 1.442695, %v589_v62  ;;  %v637_v1 = vmul.f32 1.442695, %v590_v63 }
 0x24f   : > { %v565_v2 = vpop.xlane.xlu1 %564  ;;  %v665_v3 = vadd.f32 %v1647_v36, %v1645_v35 }
 0x250   : > { %1179 = vpow2.f32 %v635_v0  ;;  %v591_v4 = vsub.f32 %v1579_v41, %v565_v2  ;;  %v592_v5 = vsub.f32 %v1581_v42, %v565_v2 }
 0x251   : > { %v1653_v38 = vpop.eup %1167  ;;  %1181 = vpow2.f32 %v637_v1  ;;  %666 = vadd.xlane.f32.xlu1 %v665_v3 }
 0x252   : > { %v1655_v39 = vpop.eup %1169  ;;  %v639_v6 = vmul.f32 1.442695, %v591_v4  ;;  %v641_v7 = vmul.f32 1.442695, %v592_v5 }
 0x253   : > { %v568_v10 = vpop.xlane.xlu0 %567  ;;  %v668_v11 = vadd.f32 %v1655_v39, %v1653_v38 }
 0x254   : > { %1183 = vpow2.f32 %v639_v6  ;;  %v593_v12 = vsub.f32 %v1585_v44, %v568_v10  ;;  %v594_v13 = vsub.f32 %v1587_v45, %v568_v10 }
 0x255   : > { %v1661_v41 = vpop.eup %1171  ;;  %1185 = vpow2.f32 %v641_v7  ;;  %669 = vadd.xlane.f32.xlu0 %v668_v11 }
 0x256   : > { %v1663_v42 = vpop.eup %1173  ;;  %v643_v14 = vmul.f32 1.442695, %v593_v12  ;;  %v645_v15 = vmul.f32 1.442695, %v594_v13 }
 0x257   : > { %v671_v18 = vadd.f32 %v1663_v42, %v1661_v41 }
 0x258   : > { %1187 = vpow2.f32 %v643_v14 }
 0x259   : > { %v1667_v19 = vpop.eup %1175  ;;  %1189 = vpow2.f32 %v645_v15  ;;  %672 = vadd.xlane.f32.xlu1 %v671_v18 }
 0x25a   : > { %v1669_v20 = vpop.eup %1177 }
 0x25b   : > { %v674_v44 = vadd.f32 %v1669_v20, %v1667_v19 }
 0x25d   : > { %v1673_v45 = vpop.eup %1179  ;;  %675 = vadd.xlane.f32.xlu0 %v674_v44 }
 0x25e   : > { %v1675_v21 = vpop.eup %1181 }
 0x25f   : > { %v677_v22 = vadd.f32 %v1675_v21, %v1673_v45 }
 0x261   : > { %v1679_v25 = vpop.eup %1183  ;;  %678 = vadd.xlane.f32.xlu1 %v677_v22 }
 0x262   : > { %v1681_v28 = vpop.eup %1185 }
 0x263   : > { %v680_v31 = vadd.f32 %v1681_v28, %v1679_v25 }
 0x265   : > { %v1685_v34 = vpop.eup %1187  ;;  %681 = vadd.xlane.f32.xlu0 %v680_v31 }
 0x266   : > { %v1687_v37 = vpop.eup %1189 }
 0x267   : > { %v683_v40 = vadd.f32 %v1687_v37, %v1685_v34 }
 0x269   : > { %684 = vadd.xlane.f32.xlu1 %v683_v40 }
 0x2c2   : > { %v649_v43 = vpop.xlane.xlu1 %648 }
 0x2c3   : > { %1191 = vrcp.f32 %v649_v43 }
 0x2c6   : > { %v652_v46 = vpop.xlane.xlu0 %651 }
 0x2c7   : > { %1193 = vrcp.f32 %v652_v46 }
 0x2ca   : > { %v655_v47 = vpop.xlane.xlu1 %654 }
 0x2cb   : > { %1195 = vrcp.f32 %v655_v47 }
 0x2ce   : > { %v658_v48 = vpop.xlane.xlu0 %657 }
 0x2cf   : > { %1197 = vrcp.f32 %v658_v48 }
 0x2d0   : > { %v1192_v49 = vpop.eup %1191 }
 0x2d1   : > { %v700_v52 = vmul.f32 %v1192_v49, %v1599_v9  ;;  %v699_v54 = vmul.f32 %v1192_v49, %v1597_v8 }
 0x2d2   : > { %v661_v50 = vpop.xlane.xlu1 %660 }
 0x2d3   : > { %1199 = vrcp.f32 %v661_v50 }
 0x2d4   : > { %v1194_v51 = vpop.eup %1193 }
 0x2d5   : > { %v702_v53 = vmul.f32 %v1194_v51, %v1607_v17  ;;  %v701_v55 = vmul.f32 %v1194_v51, %v1605_v16 }
 0x2d6   : > { %v664_v56 = vpop.xlane.xlu0 %663 }
 0x2d7   : > { %1201 = vrcp.f32 %v664_v56  ;;  %v726_v57 = vpack.c.bf16 %v702_v53, %v700_v52  ;;  %v725_v58 = vpack.c.bf16 %v701_v55, %v699_v54 }
 0x2d8   : > { %v1196_v59 = vpop.eup %1195 }
 0x2d9   : > { %771 = vmatprep.mubr.bf16.mxu1 %v726_v57  ;;  %v704_v62 = vmul.f32 %v1196_v59, %v1615_v24  ;;  %v703_v17 = vmul.f32 %v1196_v59, %v1613_v23 }
 0x2da   : > { %v667_v60 = vpop.xlane.xlu1 %666  ;;  %772 = vmatmul.mubr.bf16.vlgmr.msra.gmra.mxu1 %v725_v58 }
 0x2db   : > { %1203 = vrcp.f32 %v667_v60 }
 0x2dc   : > { %v1198_v61 = vpop.eup %1197 }
 0x2dd   : > { %v706_v9 = vmul.f32 %v1198_v61, %v1623_v27  ;;  %v705_v8 = vmul.f32 %v1198_v61, %v1621_v26 }
 0x2de   : > { %v670_v63 = vpop.xlane.xlu0 %669 }
 0x2df   : > { %1205 = vrcp.f32 %v670_v63  ;;  %v728_v16 = vpack.c.bf16 %v706_v9, %v704_v62  ;;  %v727_v0 = vpack.c.bf16 %v705_v8, %v703_v17 }
 0x2e0   : > { %v1200_v1 = vpop.eup %1199 }
 0x2e1   : > { %781 = vmatprep.mubr.bf16.mxu1 %v728_v16  ;;  %v708_v4 = vmul.f32 %v1200_v1, %v1631_v30  ;;  %v707_v27 = vmul.f32 %v1200_v1, %v1629_v29 }
 0x2e2   : > { %v673_v2 = vpop.xlane.xlu1 %672  ;;  %782 = vmatmul.mubr.bf16.gmra.mxu1 %v727_v0 }
 0x2e3   : > { %1207 = vrcp.f32 %v673_v2 }
 0x2e4   : > { %v1202_v3 = vpop.eup %1201 }
 0x2e5   : > { %v710_v24 = vmul.f32 %v1202_v3, %v1639_v33  ;;  %v709_v23 = vmul.f32 %v1202_v3, %v1637_v32 }
 0x2e6   : > { %v676_v5 = vpop.xlane.xlu0 %675 }
 0x2e7   : > { %1209 = vrcp.f32 %v676_v5  ;;  %v730_v26 = vpack.c.bf16 %v710_v24, %v708_v4  ;;  %v729_v6 = vpack.c.bf16 %v709_v23, %v707_v27 }
 0x2e8   : > { %v1204_v7 = vpop.eup %1203 }
 0x2e9   : > { %791 = vmatprep.mubr.bf16.mxu1 %v730_v26  ;;  %v712_v12 = vmul.f32 %v1204_v7, %v1647_v36  ;;  %v711_v33 = vmul.f32 %v1204_v7, %v1645_v35 }
 0x2ea   : > { %v679_v10 = vpop.xlane.xlu1 %678  ;;  %792 = vmatmul.mubr.bf16.gmra.mxu1 %v729_v6 }
 0x2eb   : > { %1211 = vrcp.f32 %v679_v10 }
 0x2ec   : > { %v1206_v11 = vpop.eup %1205 }
 0x2ed   : > { %v714_v30 = vmul.f32 %v1206_v11, %v1655_v39  ;;  %v713_v29 = vmul.f32 %v1206_v11, %v1653_v38 }
 0x2ee   : > { %v682_v13 = vpop.xlane.xlu0 %681 }
 0x2ef   : > { %1213 = vrcp.f32 %v682_v13  ;;  %v732_v32 = vpack.c.bf16 %v714_v30, %v712_v12  ;;  %v731_v14 = vpack.c.bf16 %v713_v29, %v711_v33 }
 0x2f0   : > { %v1208_v15 = vpop.eup %1207 }
 0x2f1   : > { %801 = vmatprep.mubr.bf16.mxu1 %v732_v32  ;;  %v716_v22 = vmul.f32 %v1208_v15, %v1663_v42  ;;  %v715_v39 = vmul.f32 %v1208_v15, %v1661_v41 }
 0x2f2   : > { %v685_v18 = vpop.xlane.xlu1 %684  ;;  %802 = vmatmul.mubr.bf16.gmra.mxu1 %v731_v14 }
 0x2f3   : > { %1215 = vrcp.f32 %v685_v18 }
 0x2f4   : > { %v1210_v44 = vpop.eup %1209 }
 0x2f5   : > { %v718_v36 = vmul.f32 %v1210_v44, %v1669_v20  ;;  %v717_v35 = vmul.f32 %v1210_v44, %v1667_v19 }
 0x2f7   : > { %v734_v31 = vpack.c.bf16 %v718_v36, %v716_v22  ;;  %v733_v38 = vpack.c.bf16 %v717_v35, %v715_v39 }
 0x2f8   : > { %v1212_v40 = vpop.eup %1211 }
 0x2f9   : > { %811 = vmatprep.mubr.bf16.mxu1 %v734_v31  ;;  %v720_v46 = vmul.f32 %v1212_v40, %v1675_v21  ;;  %v719_v48 = vmul.f32 %v1212_v40, %v1673_v45 }
 0x2fa   : > { %812 = vmatmul.mubr.bf16.gmra.mxu1 %v733_v38 }
 0x2fc   : > { %v1214_v43 = vpop.eup %1213 }
 0x2fd   : > { %v722_v47 = vmul.f32 %v1214_v43, %v1681_v28  ;;  %v721_v42 = vmul.f32 %v1214_v43, %v1679_v25 }
 0x2ff   : > { %v736_v20 = vpack.c.bf16 %v722_v47, %v720_v46  ;;  %v735_v49 = vpack.c.bf16 %v721_v42, %v719_v48 }
 0x300   : > { %v1216_v41 = vpop.eup %1215 }
 0x301   : > { %821 = vmatprep.mubr.bf16.mxu1 %v736_v20  ;;  %v724_v19 = vmul.f32 %v1216_v41, %v1687_v37  ;;  %v723_v51 = vmul.f32 %v1216_v41, %v1685_v34 }
 0x302   : > { %822 = vmatmul.mubr.bf16.gmra.mxu1 %v735_v49 }
 0x303   : > { %v738_v50 = vpack.c.bf16 %v724_v19, %v724_v19  ;;  %v737_v52 = vpack.c.bf16 %v723_v51, %v723_v51 }
 0x305   : > { %831 = vmatprep.mubr.bf16.mxu1 %v738_v50 }
 0x30a   : > { %832 = vmatmul.mubr.bf16.gmra.mxu1 %v737_v52 }
 0x39a   : > { %v773_v21 = vpop.f32.mrf.mxu1 }
 0x39b   : > { %840 = vst [vmem:[%s1719_s20] sm:$0xff] %v773_v21 }
 0x39c   : > { %v775_v45 = vpop.f32.mrf.mxu1 }
 0x39d   : > { %841 = vst [vmem:[%s1719_s20 + $0x8] sm:$0xff] %v775_v45 }
 0x39e   : > { %v777_v25 = vpop.f32.mrf.mxu1 }
 0x39f   : > { %842 = vst [vmem:[%s1719_s20 + $0x10] sm:$0xff] %v777_v25 }
 0x3a0   : > { %v779_v28 = vpop.f32.mrf.mxu1 }
 0x3a1   : > { %843 = vst [vmem:[%s1719_s20 + $0x18] sm:$0xff] %v779_v28 }
 0x3a2   : > { %v783_v34 = vpop.f32.mrf.mxu1 }
 0x3a3   : > { %844 = vst [vmem:[%s1719_s20 + $0x20] sm:$0xff] %v783_v34 }
 0x3a4   : > { %v785_v37 = vpop.f32.mrf.mxu1 }
 0x3a5   : > { %845 = vst [vmem:[%s1719_s20 + $0x28] sm:$0xff] %v785_v37 }
 0x3a6   : > { %v787_v53 = vpop.f32.mrf.mxu1 }
 0x3a7   : > { %846 = vst [vmem:[%s1719_s20 + $0x30] sm:$0xff] %v787_v53 }
 0x3a8   : > { %v789_v54 = vpop.f32.mrf.mxu1 }
 0x3a9   : > { %847 = vst [vmem:[%s1719_s20 + $0x38] sm:$0xff] %v789_v54 }
 0x3aa   : > { %v793_v55 = vpop.f32.mrf.mxu1 }
 0x3ab   : > { %848 = vst [vmem:[%s1719_s20 + $0x40] sm:$0xff] %v793_v55 }
 0x3ac   : > { %v795_v56 = vpop.f32.mrf.mxu1 }
 0x3ad   : > { %849 = vst [vmem:[%s1719_s20 + $0x48] sm:$0xff] %v795_v56 }
 0x3ae   : > { %v797_v57 = vpop.f32.mrf.mxu1 }
 0x3af   : > { %850 = vst [vmem:[%s1719_s20 + $0x50] sm:$0xff] %v797_v57 }
 0x3b0   : > { %v799_v58 = vpop.f32.mrf.mxu1 }
 0x3b1   : > { %851 = vst [vmem:[%s1719_s20 + $0x58] sm:$0xff] %v799_v58 }
 0x3b2   : > { %v803_v59 = vpop.f32.mrf.mxu1 }
 0x3b3   : > { %852 = vst [vmem:[%s1719_s20 + $0x60] sm:$0xff] %v803_v59 }
 0x3b4   : > { %v805_v60 = vpop.f32.mrf.mxu1 }
 0x3b5   : > { %853 = vst [vmem:[%s1719_s20 + $0x68] sm:$0xff] %v805_v60 }
 0x3b6   : > { %v807_v61 = vpop.f32.mrf.mxu1 }
 0x3b7   : > { %854 = vst [vmem:[%s1719_s20 + $0x70] sm:$0xff] %v807_v61 }
 0x3b8   : > { %v809_v62 = vpop.f32.mrf.mxu1 }
 0x3b9   : > { %855 = vst [vmem:[%s1719_s20 + $0x78] sm:$0xff] %v809_v62 }
 0x3ba   : > { %v813_v9 = vpop.f32.mrf.mxu1 }
 0x3bb   : > { %856 = vst [vmem:[%s1719_s20 + $0x80] sm:$0xff] %v813_v9 }
 0x3bc   : > { %v815_v17 = vpop.f32.mrf.mxu1 }
 0x3bd   : > { %857 = vst [vmem:[%s1719_s20 + $0x88] sm:$0xff] %v815_v17 }
 0x3be   : > { %v817_v8 = vpop.f32.mrf.mxu1 }
 0x3bf   : > { %858 = vst [vmem:[%s1719_s20 + $0x90] sm:$0xff] %v817_v8 }
 0x3c0   : > { %v819_v63 = vpop.f32.mrf.mxu1 }
 0x3c1   : > { %859 = vst [vmem:[%s1719_s20 + $0x98] sm:$0xff] %v819_v63 }
 0x3c2   : > { %v823_v16 = vpop.f32.mrf.mxu1 }
 0x3c3   : > { %860 = vst [vmem:[%s1719_s20 + $0xa0] sm:$0xff] %v823_v16 }
 0x3c4   : > { %v825_v0 = vpop.f32.mrf.mxu1 }
 0x3c5   : > { %861 = vst [vmem:[%s1719_s20 + $0xa8] sm:$0xff] %v825_v0 }
 0x3c6   : > { %v827_v1 = vpop.f32.mrf.mxu1 }
 0x3c7   : > { %862 = vst [vmem:[%s1719_s20 + $0xb0] sm:$0xff] %v827_v1 }
 0x3c8   : > { %v829_v2 = vpop.f32.mrf.mxu1 }
 0x3c9   : > { %863 = vst [vmem:[%s1719_s20 + $0xb8] sm:$0xff] %v829_v2 }
 0x3ca   : > { %v833_v3 = vpop.f32.mrf.mxu1 }
 0x3cb   : > { %864 = vst [vmem:[%s1719_s20 + $0xc0] sm:$0xff] %v833_v3 }
 0x3cc   : > { %v835_v4 = vpop.f32.mrf.mxu1  ;;  %873 = sbr.rel (!%p1820_p4) target bundleno = 1004 (0x3ec), region = 40 }
 0x3cd   : > { %865 = vst [vmem:[%s1719_s20 + $0xc8] sm:$0xff] %v835_v4 }
 0x3ce   : > { %v837_v24 = vpop.f32.mrf.mxu1 }
 0x3d0   : > { %v838_v27 = vpop.f32.mrf.mxu1 }
 0x3d1   : > { %s1830_s14 = smov (!%p876_p13, %s875_s14), 13 }
 0x3d2   : > { %s1751_s19 = sshll.u32 %s1830_s14, 8 }
 0x3d3   : > { %s881_s26 = ssub.s32 3328, %s1751_s19 }
 0x3d4   : > { %882 = vsyncadd %s867_s23, %s881_s26  ;;  %p1018_p5 = scmp.ne.s32.totalorder %s1751_s19, 0  ;;  %s1032_s21 = smul.u32 3328, %s1384_s13 }
 0x3d5   : > { %s888_s30 = sshll.u32 %s1719_s20, 4  ;;  %s1345_s8 = smov [#allocation7]   ;;  %s1764_s30 = int_to_ptr.vmem [resolvable:$true] %s888_s30 }
 0x3d6   : > { %s1762_s5 = scalar_lea.hbm %s1811_s2, %s1032_s21  ;;  %s1269_s6 = scalar_lea.vmem %s1764_s30, %s1751_s19 }
 0x3d7   : > { %p1270_p1 = scmp.ne.s32.totalorder %s1764_s30, %s1269_s6  ;;  %s1273_s16 = sshll.u32 %s1345_s8, 4  ;;  %s1274_s16 = int_to_ptr.vmem [resolvable:$false] %s1273_s16 }
 0x3d8   : > { %s1275_s13 = scalar_lea.vmem %s1274_s16, 6656  ;;  %p1276_p3 = scmp.lt.s32.totalorder %s1764_s30, %s1274_s16 }
 0x3d9   : > { %p1271_p0 = pnand %p1270_p1, %p1018_p5  ;;  %p1277_p8 = scmp.lt.s32.totalorder %s1275_s13, %s1269_s6 }
 0x3db   : > { %p1272_p7 = pneg %p1271_p0  ;;  %p1278_p9 = por %p1277_p8, %p1276_p3 }
 0x3dd   : > { %p1279_p6 = pnand %p1278_p9, %p1272_p7 }
 0x3df   : > { %1282 = shalt.err (!%p1279_p6)
}
 0x3e0   : > { %s1283_s17 = scalar_lea.hbm %s1762_s5, %s1751_s19  ;;  %s1287_s28 = scalar_lea.hbm %s1811_s2, 6400 }
 0x3e1   : > { %p1284_p11 = scmp.ne.s32.totalorder %s1762_s5, %s1283_s17  ;;  %p1288_p10 = scmp.lt.s32.totalorder %s1762_s5, %s1811_s2 }
 0x3e2   : > { %p1289_p4 = scmp.lt.s32.totalorder %s1287_s28, %s1283_s17 }
 0x3e3   : > { %p1285_p12 = pnand %p1284_p11, %p1018_p5 }
 0x3e4   : > { %p1290_p13 = por %p1289_p4, %p1288_p10 }
 0x3e5   : > { %p1286_p2 = pneg %p1285_p12 }
 0x3e7   : > { %p1291_p1 = pnand %p1290_p13, %p1286_p2 }
 0x3e9   : > { %1294 = shalt.err (!%p1291_p1)
}
 0x3ea   : > { %s1346_s7 = smov 256   ;;  %s1347_s14 = smov 16  }
 0x3eb   : > { %894 = dma.vmem_to_hbm [thread:$0]  (%p1018_p5), %s1764_s30, %s1751_s19, %s1762_s5, %s867_s23, %s1346_s7, %s1346_s7, %s1347_s14  }
 0x3ec PF: > { %s903_s26 = sand.u32 1, %s1325_s9   ;;  %p1821_p0 = scmp.ne.s32.totalorder %s1817_s22, 0 }
 0x3ed   : > { %p1822_p7 = scmp.ge.s32.totalorder %s1337_s12, 2  ;;  %s904_s21 = scalar_lea.sflag [#allocation4], %s903_s26 }
 0x3ef   : > { %p1046_p3 = pnand %p1822_p7, %p1821_p0 }
 0x3f1   : > { %p1047_p8 = pneg %p1046_p3 }
 0x3f3   : > { %1320 = dma.done.wait (%p1047_p8), %s904_s21, 3328  }
 0x3f4   : > { %1322 = vsyncadd (%p1047_p8), %s904_s21, 4294963968  ;;  %p16_p9 = scmp.ge.s32.totalorder %s1388_s15, 4   ;;  %s1823_s9 = smov %s1329_s10 }
 0x3f5   : > { %s1824_s10 = smov %s1333_s11  ;;  %s1825_s11 = smov %s1400_s18 }
 0x3f6   : > { %s1826_s12 = smov %s1388_s15  ;;  %18 = sbr.rel (!%p16_p9) target bundleno = 6 (0x6), region = 77 }
 0x3fb   :  { %909 = vsyncpa [#allocation3], 1 }
 0x3fc   :  { %911 = vsyncpa [#allocation3 + $0x1], 1 }
 0x3fd   :  { %912 = vsyncpa [#allocation6], 1 }
 0x3fe   :  { %913 = vsyncpa [#allocation4], 1 }
 0x3ff   :  { %915 = vsyncpa [#allocation4 + $0x1], 1 }

</bundles_post_ra>
